<compile_context>
chip_gen: v7x
topology: tpu7x:2x2x1
jax: 0.10.0
libtpu: 0.0.40
codegen_flags: <defaults>
</compile_context>

<pallas_src>
import functools

import jax
import jax.numpy as jnp
from jax.experimental import pallas as pl
from jax.experimental.pallas import tpu as pltpu


def _round_up(x, m):
    return (x + m - 1) // m * m


def _rnn_agent_kernel(
    x_ref,     # [BT, I]   f32 inputs tile
    h_ref,     # [BT, H]   f32 hidden-state tile
    w1_ref,    # [I, H]    bf16 fc1 weight (transposed)
    b1_ref,    # [1, H]    f32 fc1 bias
    wg_ref,    # [2H, 4H]  bf16 fused GRU gate weight (cols: rz | i_n | h_n)
    bg_ref,    # [1, 4H]   f32 fused GRU gate bias
    w2_ref,    # [H, Ap]   bf16 fc2 weight (transposed, lane-padded)
    b2_ref,    # [1, Ap]   f32 fc2 bias (lane-padded)
    q_ref,     # [BT, Ap]  f32 out q-values (lane-padded)
    hout_ref,  # [BT, H]   f32 out hidden state
    *,
    hidden_dim: int,
):
    H = hidden_dim
    h_f32 = h_ref[...].astype(jnp.float32)

    # ---- fc1 + ReLU (bf16 MXU operands, f32 accumulate) --------------------
    x1 = jnp.dot(x_ref[...].astype(jnp.bfloat16), w1_ref[...],
                 preferred_element_type=jnp.float32) + b1_ref[...]
    x1 = jnp.maximum(x1, 0.0)

    # ---- fused GRU gate matmul ----------------------------------------------
    # g[:, 0:2H]  = x1 @ Wih_rz^T + h @ Whh_rz^T + (bih_rz + bhh_rz)
    # g[:, 2H:3H] = x1 @ Wih_n^T  + bih_n                         (= i_n)
    # g[:, 3H:4H] = h  @ Whh_n^T  + bhh_n                         (= h_n)
    xh = jnp.concatenate(
        [x1.astype(jnp.bfloat16), h_f32.astype(jnp.bfloat16)], axis=1)
    g = jnp.dot(xh, wg_ref[...], preferred_element_type=jnp.float32) + bg_ref[...]

    rz = jax.nn.sigmoid(g[:, : 2 * H])      # one sigmoid for both r and z
    r = rz[:, :H]
    z = rz[:, H: 2 * H]
    n = jnp.tanh(g[:, 2 * H: 3 * H] + r * g[:, 3 * H: 4 * H])
    h_new = (1.0 - z) * n + z * h_f32

    # ---- fc2 (lane-dense padded output) --------------------------------------
    q = jnp.dot(h_new.astype(jnp.bfloat16), w2_ref[...],
                preferred_element_type=jnp.float32) + b2_ref[...]

    q_ref[...] = q.astype(q_ref.dtype)
    hout_ref[...] = h_new.astype(hout_ref.dtype)


def _pack_params(params, hidden_dim, n_actions, a_pad):
    """Pre-transpose / fuse / pad weights (plain-JAX glue, done once under jit)."""
    H = hidden_dim
    w1 = params["fc1_w"].T.astype(jnp.bfloat16)           # [I, H]
    b1 = params["fc1_b"][None, :].astype(jnp.float32)     # [1, H]

    wih, whh = params["gru_w_ih"], params["gru_w_hh"]     # [3H, H] each
    bih, bhh = params["gru_b_ih"], params["gru_b_hh"]     # [3H] each
    zeros_hh = jnp.zeros((H, H), jnp.float32)
    top = jnp.concatenate([wih[: 2 * H].T, wih[2 * H:].T, zeros_hh], axis=1)  # [H, 4H]
    bot = jnp.concatenate([whh[: 2 * H].T, zeros_hh, whh[2 * H:].T], axis=1)  # [H, 4H]
    wg = jnp.concatenate([top, bot], axis=0).astype(jnp.bfloat16)             # [2H, 4H]
    bg = jnp.concatenate(
        [bih[: 2 * H] + bhh[: 2 * H], bih[2 * H:], bhh[2 * H:]]
    )[None, :].astype(jnp.float32)                                            # [1, 4H]

    w2 = jnp.zeros((H, a_pad), jnp.float32).at[:, :n_actions].set(params["fc2_w"].T)
    w2 = w2.astype(jnp.bfloat16)                                              # [H, Ap]
    b2 = jnp.zeros((1, a_pad), jnp.float32).at[0, :n_actions].set(params["fc2_b"])
    return w1, b1, wg, bg, w2, b2


@functools.partial(jax.jit, static_argnames=("hidden_dim", "n_actions", "block_b"))
def rnn_agent_forward(inputs, hidden_state, params, *, hidden_dim, n_actions,
                      block_b=256):
    """Forward pass of RNNAgent. inputs: [B, I], hidden_state: [..., H]."""
    B, I = inputs.shape
    H = hidden_dim
    A = n_actions
    A_pad = _round_up(A, 128)

    BT = min(block_b, _round_up(B, 8))
    B_pad = _round_up(B, BT)
    grid = (B_pad // BT,)

    # Fresh, batch-padded activation buffers (h_p is donated to the aliased
    # hidden-state output, so it must not share a buffer with caller arrays).
    x_p = jnp.zeros((B_pad, I), jnp.float32).at[:B].set(inputs.astype(jnp.float32))
    h_p = jnp.zeros((B_pad, H), jnp.float32).at[:B].set(
        hidden_state.reshape(-1, H).astype(jnp.float32))

    w1, b1, wg, bg, w2, b2 = _pack_params(params, H, A, A_pad)

    tiled = lambda shape: pl.BlockSpec(shape, lambda i: (i, 0))       # batch-tiled
    resident = lambda shape: pl.BlockSpec(shape, lambda i: (0, 0))    # VMEM-resident

    kernel = functools.partial(_rnn_agent_kernel, hidden_dim=H)

    q_pad, h_out = pl.pallas_call(
        kernel,
        out_shape=(
            jax.ShapeDtypeStruct((B_pad, A_pad), jnp.float32),
            jax.ShapeDtypeStruct((B_pad, H), jnp.float32),
        ),
        grid=grid,
        in_specs=[
            tiled((BT, I)),
            tiled((BT, H)),
            resident((I, H)),
            resident((1, H)),
            resident((2 * H, 4 * H)),
            resident((1, 4 * H)),
            resident((H, A_pad)),
            resident((1, A_pad)),
        ],
        out_specs=(
            tiled((BT, A_pad)),
            tiled((BT, H)),
        ),
        input_output_aliases={1: 1},   # h_in buffer reused for h_out
        compiler_params=pltpu.CompilerParams(
            dimension_semantics=("parallel",),
            vmem_limit_bytes=48 * 1024 * 1024,
        ),
    )(x_p, h_p, w1, b1, wg, bg, w2, b2)

    return q_pad[:B, :A], h_out[:B]


def init_params(key, input_shape, hidden_dim, n_actions):
    """Deterministic synthetic parameter init (PyTorch-like uniform ranges)."""
    ks = jax.random.split(key, 8)
    H, I, A = hidden_dim, input_shape, n_actions

    def u(k, shape, fan_in):
        bound = 1.0 / jnp.sqrt(jnp.float32(fan_in))
        return jax.random.uniform(k, shape, jnp.float32, -bound, bound)

    return {
        "fc1_w": u(ks[0], (H, I), I),          # nn.Linear(I, H).weight
        "fc1_b": u(ks[1], (H,), I),
        "gru_w_ih": u(ks[2], (3 * H, H), H),   # nn.GRUCell(H, H).weight_ih
        "gru_b_ih": u(ks[3], (3 * H,), H),
        "gru_w_hh": u(ks[4], (3 * H, H), H),
        "gru_b_hh": u(ks[5], (3 * H,), H),
        "fc2_w": u(ks[6], (A, H), H),          # nn.Linear(H, A).weight
        "fc2_b": u(ks[7], (A,), H),
    }


def _reference_forward(inputs, hidden_state, params, hidden_dim):
    """Pure-JAX f32 reference mirroring the PyTorch module."""
    H = hidden_dim
    x = jnp.maximum(inputs @ params["fc1_w"].T + params["fc1_b"], 0.0)
    h = hidden_state.reshape(-1, H)
    gi = x @ params["gru_w_ih"].T + params["gru_b_ih"]
    gh = h @ params["gru_w_hh"].T + params["gru_b_hh"]
    i_r, i_z, i_n = gi[:, :H], gi[:, H:2 * H], gi[:, 2 * H:]
    h_r, h_z, h_n = gh[:, :H], gh[:, H:2 * H], gh[:, 2 * H:]
    r = jax.nn.sigmoid(i_r + h_r)
    z = jax.nn.sigmoid(i_z + h_z)
    n = jnp.tanh(i_n + r * h_n)
    h_new = (1.0 - z) * n + z * h
    q = h_new @ params["fc2_w"].T + params["fc2_b"]
    return q, h_new


if __name__ == "__main__":
    # Small shapes consistent with the module's forward pass.
    B = 512          # e.g. n_agents * batch_size
    INPUT = 30       # input_shape
    HIDDEN = 64      # args.rnn_hidden_dim
    N_ACTIONS = 11   # args.n_actions

    key = jax.random.PRNGKey(0)
    k_param, k_x, k_h = jax.random.split(key, 3)

    params = init_params(k_param, INPUT, HIDDEN, N_ACTIONS)
    inputs = jax.random.normal(k_x, (B, INPUT), jnp.float32)
    hidden = jax.random.normal(k_h, (B, HIDDEN), jnp.float32)

    q, h_out = rnn_agent_forward(
        inputs, hidden, params,
        hidden_dim=HIDDEN, n_actions=N_ACTIONS, block_b=256,
    )
    jax.block_until_ready((q, h_out))

    q_ref, h_ref = _reference_forward(inputs, hidden, params, HIDDEN)
    assert q.shape == (B, N_ACTIONS) and h_out.shape == (B, HIDDEN)
    # bf16 MXU operands (f32 accumulation) vs the pure-f32 reference.
    assert jnp.allclose(q, q_ref, atol=5e-2, rtol=5e-2), "q mismatch"
    assert jnp.allclose(h_out, h_ref, atol=5e-2, rtol=5e-2), "h mismatch"

    print("KERNEL_OK")
</pallas_src>

<mosaic_0001>
module attributes {stable_mosaic.version = 11 : i64} {
  func.func @_rnn_agent_kernel(%arg0: i32, %arg1: memref<256x30xf32, #tpu.memory_space<vmem>>, %arg2: memref<256x64xf32, #tpu.memory_space<vmem>>, %arg3: memref<30x64xbf16, #tpu.memory_space<vmem>>, %arg4: memref<1x64xf32, #tpu.memory_space<vmem>>, %arg5: memref<128x256xbf16, #tpu.memory_space<vmem>>, %arg6: memref<1x256xf32, #tpu.memory_space<vmem>>, %arg7: memref<64x128xbf16, #tpu.memory_space<vmem>>, %arg8: memref<1x128xf32, #tpu.memory_space<vmem>>, %arg9: memref<256x128xf32, #tpu.memory_space<vmem>>, %arg10: memref<256x64xf32, #tpu.memory_space<vmem>>) attributes {dimension_semantics = [#tpu.dimension_semantics<parallel>], iteration_bounds = array<i64: 2>, scalar_prefetch = 0 : i64, scratch_operands = 0 : i64, tpu.core_type = #tpu.core_type<tc>, window_params = [{transform_indices = @transform_0, window_bounds = array<i64: 256, 30>}, {transform_indices = @transform_1, window_bounds = array<i64: 256, 64>}, {pipeline_mode = #tpu.pipeline_mode<synchronous>, transform_indices = @transform_2, window_bounds = array<i64: 30, 64>}, {pipeline_mode = #tpu.pipeline_mode<synchronous>, transform_indices = @transform_3, window_bounds = array<i64: 1, 64>}, {pipeline_mode = #tpu.pipeline_mode<synchronous>, transform_indices = @transform_4, window_bounds = array<i64: 128, 256>}, {pipeline_mode = #tpu.pipeline_mode<synchronous>, transform_indices = @transform_5, window_bounds = array<i64: 1, 256>}, {pipeline_mode = #tpu.pipeline_mode<synchronous>, transform_indices = @transform_6, window_bounds = array<i64: 64, 128>}, {pipeline_mode = #tpu.pipeline_mode<synchronous>, transform_indices = @transform_7, window_bounds = array<i64: 1, 128>}, {transform_indices = @transform_8, window_bounds = array<i64: 256, 128>}, {transform_indices = @transform_9, window_bounds = array<i64: 256, 64>}]} {
    %c0 = arith.constant 0 : index
    %c0_0 = arith.constant 0 : index
    %0 = vector.load %arg2[%c0, %c0_0] : memref<256x64xf32, #tpu.memory_space<vmem>>, vector<256x64xf32>
    %c0_1 = arith.constant 0 : index
    %c0_2 = arith.constant 0 : index
    %1 = vector.load %arg1[%c0_1, %c0_2] : memref<256x30xf32, #tpu.memory_space<vmem>>, vector<256x30xf32>
    %2 = arith.truncf %1 : vector<256x30xf32> to vector<256x30xbf16>
    %c0_3 = arith.constant 0 : index
    %c0_4 = arith.constant 0 : index
    %3 = vector.load %arg3[%c0_3, %c0_4] : memref<30x64xbf16, #tpu.memory_space<vmem>>, vector<30x64xbf16>
    %cst = arith.constant dense<0.000000e+00> : vector<256x64xf32>
    %4 = tpu.matmul %2, %3, %cst {dimension_numbers = #tpu.dot_dimension_numbers<[1], [0], [0], [1], [0, 0, 1, 1], [], []>} : vector<256x30xbf16>, vector<30x64xbf16>, vector<256x64xf32> -> vector<256x64xf32>
    %c0_5 = arith.constant 0 : index
    %c0_6 = arith.constant 0 : index
    %5 = vector.load %arg4[%c0_5, %c0_6] : memref<1x64xf32, #tpu.memory_space<vmem>>, vector<1x64xf32>
    %6 = vector.broadcast %5 : vector<1x64xf32> to vector<256x64xf32>
    %7 = arith.addf %4, %6 : vector<256x64xf32>
    %cst_7 = arith.constant 0.000000e+00 : f32
    %8 = vector.broadcast %cst_7 : f32 to vector<256x64xf32>
    %9 = arith.maximumf %7, %8 : vector<256x64xf32>
    %10 = arith.truncf %9 : vector<256x64xf32> to vector<256x64xbf16>
    %11 = arith.truncf %0 : vector<256x64xf32> to vector<256x64xbf16>
    %12 = tpu.concatenate %10, %11 in 1 : vector<256x64xbf16>, vector<256x64xbf16> -> vector<256x128xbf16>
    %c0_8 = arith.constant 0 : index
    %c0_9 = arith.constant 0 : index
    %13 = vector.load %arg5[%c0_8, %c0_9] : memref<128x256xbf16, #tpu.memory_space<vmem>>, vector<128x256xbf16>
    %cst_10 = arith.constant dense<0.000000e+00> : vector<256x256xf32>
    %14 = tpu.matmul %12, %13, %cst_10 {dimension_numbers = #tpu.dot_dimension_numbers<[1], [0], [0], [1], [0, 0, 1, 1], [], []>} : vector<256x128xbf16>, vector<128x256xbf16>, vector<256x256xf32> -> vector<256x256xf32>
    %c0_11 = arith.constant 0 : index
    %c0_12 = arith.constant 0 : index
    %15 = vector.load %arg6[%c0_11, %c0_12] : memref<1x256xf32, #tpu.memory_space<vmem>>, vector<1x256xf32>
    %16 = vector.broadcast %15 : vector<1x256xf32> to vector<256x256xf32>
    %17 = arith.addf %14, %16 : vector<256x256xf32>
    %18 = vector.extract_strided_slice %17 {offsets = [0, 0], sizes = [256, 128], strides = [1, 1]} : vector<256x256xf32> to vector<256x128xf32>
    %19 = arith.negf %18 : vector<256x128xf32>
    %20 = math.exp %19 : vector<256x128xf32>
    %cst_13 = arith.constant 1.000000e+00 : f32
    %21 = vector.broadcast %cst_13 : f32 to vector<256x128xf32>
    %22 = arith.addf %21, %20 : vector<256x128xf32>
    %23 = arith.divf %21, %22 : vector<256x128xf32>
    %24 = vector.extract_strided_slice %23 {offsets = [0, 0], sizes = [256, 64], strides = [1, 1]} : vector<256x128xf32> to vector<256x64xf32>
    %25 = vector.extract_strided_slice %23 {offsets = [0, 64], sizes = [256, 64], strides = [1, 1]} : vector<256x128xf32> to vector<256x64xf32>
    %26 = vector.extract_strided_slice %17 {offsets = [0, 128], sizes = [256, 64], strides = [1, 1]} : vector<256x256xf32> to vector<256x64xf32>
    %27 = vector.extract_strided_slice %17 {offsets = [0, 192], sizes = [256, 64], strides = [1, 1]} : vector<256x256xf32> to vector<256x64xf32>
    %28 = arith.mulf %24, %27 : vector<256x64xf32>
    %29 = arith.addf %26, %28 : vector<256x64xf32>
    %30 = math.tanh %29 : vector<256x64xf32>
    %cst_14 = arith.constant 1.000000e+00 : f32
    %31 = vector.broadcast %cst_14 : f32 to vector<256x64xf32>
    %32 = arith.subf %31, %25 : vector<256x64xf32>
    %33 = arith.mulf %32, %30 : vector<256x64xf32>
    %34 = arith.mulf %25, %0 : vector<256x64xf32>
    %35 = arith.addf %33, %34 : vector<256x64xf32>
    %36 = arith.truncf %35 : vector<256x64xf32> to vector<256x64xbf16>
    %c0_15 = arith.constant 0 : index
    %c0_16 = arith.constant 0 : index
    %37 = vector.load %arg7[%c0_15, %c0_16] : memref<64x128xbf16, #tpu.memory_space<vmem>>, vector<64x128xbf16>
    %cst_17 = arith.constant dense<0.000000e+00> : vector<256x128xf32>
    %38 = tpu.matmul %36, %37, %cst_17 {dimension_numbers = #tpu.dot_dimension_numbers<[1], [0], [0], [1], [0, 0, 1, 1], [], []>} : vector<256x64xbf16>, vector<64x128xbf16>, vector<256x128xf32> -> vector<256x128xf32>
    %c0_18 = arith.constant 0 : index
    %c0_19 = arith.constant 0 : index
    %39 = vector.load %arg8[%c0_18, %c0_19] : memref<1x128xf32, #tpu.memory_space<vmem>>, vector<1x128xf32>
    %40 = vector.broadcast %39 : vector<1x128xf32> to vector<256x128xf32>
    %41 = arith.addf %38, %40 : vector<256x128xf32>
    %c0_20 = arith.constant 0 : index
    %c0_21 = arith.constant 0 : index
    %42 = vector.load %arg9[%c0_20, %c0_21] : memref<256x128xf32, #tpu.memory_space<vmem>>, vector<256x128xf32>
    tpu.vector_store %arg9[%c0_20, %c0_21], %41 {strides = array<i32>} : memref<256x128xf32, #tpu.memory_space<vmem>>, vector<256x128xf32>,
    %c0_22 = arith.constant 0 : index
    %c0_23 = arith.constant 0 : index
    %43 = vector.load %arg10[%c0_22, %c0_23] : memref<256x64xf32, #tpu.memory_space<vmem>>, vector<256x64xf32>
    tpu.vector_store %arg10[%c0_22, %c0_23], %35 {strides = array<i32>} : memref<256x64xf32, #tpu.memory_space<vmem>>, vector<256x64xf32>,
    return
  }
  func.func @transform_0(%arg0: i32) -> (i32, i32) {
    %c0_i32 = arith.constant 0 : i32
    %c0_i32_0 = arith.constant 0 : i32
    return %arg0, %c0_i32 : i32, i32
  }
  func.func @transform_1(%arg0: i32) -> (i32, i32) {
    %c0_i32 = arith.constant 0 : i32
    %c0_i32_0 = arith.constant 0 : i32
    return %arg0, %c0_i32 : i32, i32
  }
  func.func @transform_2(%arg0: i32) -> (i32, i32) {
    %c0_i32 = arith.constant 0 : i32
    %c0_i32_0 = arith.constant 0 : i32
    %c0_i32_1 = arith.constant 0 : i32
    return %c0_i32, %c0_i32_0 : i32, i32
  }
  func.func @transform_3(%arg0: i32) -> (i32, i32) {
    %c0_i32 = arith.constant 0 : i32
    %c0_i32_0 = arith.constant 0 : i32
    %c0_i32_1 = arith.constant 0 : i32
    return %c0_i32, %c0_i32_0 : i32, i32
  }
  func.func @transform_4(%arg0: i32) -> (i32, i32) {
    %c0_i32 = arith.constant 0 : i32
    %c0_i32_0 = arith.constant 0 : i32
    %c0_i32_1 = arith.constant 0 : i32
    return %c0_i32, %c0_i32_0 : i32, i32
  }
  func.func @transform_5(%arg0: i32) -> (i32, i32) {
    %c0_i32 = arith.constant 0 : i32
    %c0_i32_0 = arith.constant 0 : i32
    %c0_i32_1 = arith.constant 0 : i32
    return %c0_i32, %c0_i32_0 : i32, i32
  }
  func.func @transform_6(%arg0: i32) -> (i32, i32) {
    %c0_i32 = arith.constant 0 : i32
    %c0_i32_0 = arith.constant 0 : i32
    %c0_i32_1 = arith.constant 0 : i32
    return %c0_i32, %c0_i32_0 : i32, i32
  }
  func.func @transform_7(%arg0: i32) -> (i32, i32) {
    %c0_i32 = arith.constant 0 : i32
    %c0_i32_0 = arith.constant 0 : i32
    %c0_i32_1 = arith.constant 0 : i32
    return %c0_i32, %c0_i32_0 : i32, i32
  }
  func.func @transform_8(%arg0: i32) -> (i32, i32) {
    %c0_i32 = arith.constant 0 : i32
    %c0_i32_0 = arith.constant 0 : i32
    return %arg0, %c0_i32 : i32, i32
  }
  func.func @transform_9(%arg0: i32) -> (i32, i32) {
    %c0_i32 = arith.constant 0 : i32
    %c0_i32_0 = arith.constant 0 : i32
    return %arg0, %c0_i32 : i32, i32
  }
}

</mosaic_0001>

<bundles_post_ra>
// kernel: rnn_agent_forward.1
= control target key start
LH: loop header
LB: loop body
LE: loop exit
PB: predicated region body
PF: predicated region fallthrough
CT: control target
= control target key end

     0   :  { %s3085_s30 = smov 0   ;;  %s4443_s0 = inlined_call_operand.vmem [shape: f32[512,30], index: 0, kind: input, shape index: {}]   ;;  %s4444_s1 = inlined_call_operand.vmem [shape: f32[512,64], index: 1, kind: input, shape index: {}, may-alias: {1,9}]   ;;  %s4445_s2 = inlined_call_operand.vmem [shape: bf16[30,64], index: 2, kind: input, shape index: {}]   ;;  %s4446_s3 = inlined_call_operand.vmem [shape: f32[1,64], index: 3, kind: input, shape index: {}]   ;;  %s4447_s4 = inlined_call_operand.vmem [shape: bf16[128,256], index: 4, kind: input, shape index: {}]   ;;  %s4448_s5 = inlined_call_operand.vmem [shape: f32[1,256], index: 5, kind: input, shape index: {}]   ;;  %s4449_s6 = inlined_call_operand.vmem [shape: bf16[64,128], index: 6, kind: input, shape index: {}]   ;;  %s4450_s7 = inlined_call_operand.vmem [shape: f32[1,128], index: 7, kind: input, shape index: {}]   ;;  %s4451_s8 = inlined_call_operand.vmem [shape: f32[512,128], index: 8, kind: output, shape index: {0}]   ;;  %s4452_s9 = inlined_call_operand.vmem [shape: f32[512,64], index: 9, kind: output, shape index: {1}, may-alias: {1,9}]  }
   0x1 LB: > { %s2573_s10 = sadd.s32 4294967295, %s3031_s30   ;;  %p2577_p0 = scmp.ge.s32.totalorder %s3031_s30, 1  ;;  %s3031_s30 = sphi %s3085_s30, %s20_s30  }
   0x2   : > { %p302_p1 = scmp.lt.s32.totalorder %s3031_s30, 3 }
   0x4   : > { %p303_p2 = pnand %p2577_p0, %p302_p1 }
   0x6   : > { %306 = sbr.rel (%p303_p2) target bundleno = 1170 (0x492), region = 52 }
   0xd   : > { %v2801_v0 = vld [vmem:[%s4445_s2] sm:$0xff]   ;;  %vm524_vm0 = vcmask 1046528   ;;  %v2802_v1 = vld [vmem:[%s4445_s2 + $0x8] sm:$0x7f]   ;;  %s2578_s15 = sshll.u32 %s2573_s10, 5  ;;  %vm475_vm1 = vcmask 244736  }
   0xe   : > { %2714 = vmatprep.subr.bf16.mxu0 %v2801_v0  ;;  %p349_p3 = scmp.lt.s32.totalorder %s2578_s15, 63  ;;  %v2803_v2 = vld [vmem:[%s4447_s4 + $0x4] ss:$8 sps:$4 sm:$0xff]   ;;  %v2805_v3 = vld [vmem:[%s4447_s4] ss:$8 sps:$4 sm:$0xff]   ;;  %v526_v4 = vsel %vm524_vm0, %v2802_v1, 0 }
   0xf   : > { %2715 = vmatpush3.bf16.msra.mxu0 %v2801_v0  ;;  %v2806_v5 = vld [vmem:[%s4447_s4 + $0x14] ss:$8 sps:$4 sm:$0xff]   ;;  %974 = vmatprep.subr.bf16.mxu1 %v2803_v2  ;;  %v2808_v6 = vld [vmem:[%s4447_s4 + $0x10] ss:$8 sps:$4 sm:$0xff]   ;;  %v2809_v7 = vld [vmem:[%s4447_s4 + $0x24] ss:$8 sps:$4 sm:$0xff]  }
  0x10   : > { %2790 = vmatprep.subr.msk.bf16.mxu0 %vm524_vm0, %v2802_v1  ;;  %s4539_s15 = smov (!%p349_p3, %s2578_s15), 63  ;;  %975 = vmatpush1.bf16.msra.mxu1 %v2805_v3  ;;  %v2811_v8 = vld [vmem:[%s4447_s4 + $0x20] ss:$8 sps:$4 sm:$0xff]   ;;  %v2812_v18 = vld [vmem:[%s4447_s4 + $0x34] ss:$8 sps:$4 sm:$0xff]   ;;  %s3033_s23 = smov 64  }
  0x11   : > { %s3111_s24 = sshll.u32 %s4539_s15, 3  ;;  %976 = vmatprep.subr.bf16.mxu1 %v2806_v5  ;;  %v2814_v21 = vld [vmem:[%s4447_s4 + $0x30] ss:$8 sps:$4 sm:$0xff]   ;;  %v2815_v24 = vld [vmem:[%s4447_s4 + $0x44] ss:$8 sps:$4 sm:$0xff]   ;;  %vm801_vm2 = vcmask 523264  }
  0x12   : > { %s3120_s29 = scalar_lea.vmem %s4443_s0, %s3111_s24  ;;  %s3146_s18 = scalar_lea.vmem %s4444_s1, %s3111_s24  ;;  %v2817_v29 = vld [vmem:[%s4447_s4 + $0x40] ss:$8 sps:$4 sm:$0xff]   ;;  %v2818_v63 = vld [vmem:[%s4447_s4 + $0x54] ss:$8 sps:$4 sm:$0xff]  }
  0x13   : > { %2717 = vmatpush3.bf16.msra.mxu0 %v526_v4  ;;  %v405_v9 = vld [vmem:[%s3120_s29] sm:$0xff]  ;;  %v406_v10 = vld [vmem:[%s3120_s29 + $0x8] sm:$0xff]  ;;  %v407_v11 = vld [vmem:[%s3120_s29 + $0x10] sm:$0xff]  ;;  %s4374_s17 = scalar_lea.vmem %s4451_s8, %s3111_s24 }
  0x14   : > { %v437_v12 = vpack.c.bf16 %v406_v10, %v405_v9  ;;  %v408_v13 = vld [vmem:[%s3120_s29 + $0x18] sm:$0xff]  ;;  %v409_v14 = vld [vmem:[%s3120_s29 + $0x20] sm:$0xff]  ;;  %v410_v15 = vld [vmem:[%s3120_s29 + $0x28] sm:$0xff]  ;;  %977 = vmatpush1.bf16.msra.mxu1 %v2808_v6 }
  0x15   : > { %v438_v16 = vpack.c.bf16 %v408_v13, %v407_v11  ;;  %v439_v17 = vpack.c.bf16 %v410_v15, %v409_v14  ;;  %978 = vmatprep.subr.bf16.mxu1 %v2809_v7  ;;  %v411_v19 = vld [vmem:[%s3120_s29 + $0x30] sm:$0xff]  ;;  %v412_v20 = vld [vmem:[%s3120_s29 + $0x38] sm:$0xff]  ;;  %v413_v22 = vld [vmem:[%s3120_s29 + $0x40] sm:$0xff] }
  0x16   : > { %2718 = vmatprep.mubr.msk.bf16.mxu0 %vm475_vm1, %v437_v12  ;;  %v414_v23 = vld [vmem:[%s3120_s29 + $0x48] sm:$0xff]  ;;  %v440_v25 = vpack.c.bf16 %v412_v20, %v411_v19  ;;  %v3154_v27 = vld [vmem:[%s3146_s18] sm:$0xff]  ;;  %v3165_v31 = vld [vmem:[%s3146_s18 + $0x10] sm:$0xff] }
  0x17   : > { %2719 = vmatmul.mubr.msk.bf16.vlgmr.msra.gmra.mrb[0].mxu0 %vm475_vm1, %v438_v16  ;;  %v441_v26 = vpack.c.bf16 %v414_v23, %v413_v22  ;;  %v3157_v28 = vld [vmem:[%s3146_s18 + $0x8] sm:$0xff]  ;;  %v3168_v32 = vld [vmem:[%s3146_s18 + $0x18] sm:$0xff]  ;;  %v415_v33 = vld [vmem:[%s3120_s29 + $0x50] sm:$0xff] }
  0x18   : > { %2722 = vmatprep.mubr.msk.bf16.mxu0 %vm475_vm1, %v439_v17  ;;  %979 = vmatpush1.bf16.msra.mxu1 %v2811_v8  ;;  %v737_v30 = vpack.c.bf16 %v3157_v28, %v3154_v27  ;;  %v738_v34 = vpack.c.bf16 %v3168_v32, %v3165_v31  ;;  %v3176_v35 = vld [vmem:[%s3146_s18 + $0x20] sm:$0xff]  ;;  %v3179_v36 = vld [vmem:[%s3146_s18 + $0x28] sm:$0xff]  ;;  %v3182_v37 = vld [vmem:[%s3146_s18 + $0x30] sm:$0xff] }
  0x19   : > { %980 = vmatprep.subr.bf16.mxu1 %v2812_v18  ;;  %v416_v38 = vld [vmem:[%s3120_s29 + $0x58] sm:$0xff]  ;;  %v417_v39 = vld [vmem:[%s3120_s29 + $0x60] sm:$0xff]  ;;  %v739_v40 = vpack.c.bf16 %v3179_v36, %v3176_v35  ;;  %v418_v42 = vld [vmem:[%s3120_s29 + $0x68] sm:$0xff] }
  0x1a   : > { %769 = vrot.lane.b32.xlu0 %v737_v30, %s3033_s23  ;;  %v3190_v41 = vld [vmem:[%s3146_s18 + $0x38] sm:$0xff]  ;;  %v3194_v43 = vld [vmem:[%s3146_s18 + $0x40] sm:$0xff]  ;;  %v3197_v44 = vld [vmem:[%s3146_s18 + $0x48] sm:$0xff]  ;;  %v442_v46 = vpack.c.bf16 %v416_v38, %v415_v33  ;;  %v443_v50 = vpack.c.bf16 %v418_v42, %v417_v39 }
  0x1b   : > { %773 = vrot.lane.b32.xlu1 %v739_v40, %s3033_s23  ;;  %v740_v45 = vpack.c.bf16 %v3190_v41, %v3182_v37  ;;  %v3204_v47 = vld [vmem:[%s3146_s18 + $0x50] sm:$0xff]  ;;  %v3207_v48 = vld [vmem:[%s3146_s18 + $0x58] sm:$0xff]  ;;  %v741_v49 = vpack.c.bf16 %v3197_v44, %v3194_v43  ;;  %v3212_v51 = vld [vmem:[%s3146_s18 + $0x60] sm:$0xff] }
  0x1c   : > { %981 = vmatpush1.bf16.msra.mxu1 %v2814_v21  ;;  %v3215_v52 = vld [vmem:[%s3146_s18 + $0x68] sm:$0xff]  ;;  %v3218_v53 = vld [vmem:[%s3146_s18 + $0x70] sm:$0xff]  ;;  %v420_v55 = vld [vmem:[%s3120_s29 + $0x78] sm:$0xff]  ;;  %v742_v56 = vpack.c.bf16 %v3207_v48, %v3204_v47 }
  0x1d   : > { %982 = vmatprep.subr.bf16.mxu1 %v2815_v24  ;;  %v419_v54 = vld [vmem:[%s3120_s29 + $0x70] sm:$0xff]  ;;  %v3226_v57 = vld [vmem:[%s3146_s18 + $0x78] sm:$0xff]  ;;  %v3229_v58 = vld [vmem:[%s3146_s18 + $0x80] sm:$0xff]  ;;  %v743_v62 = vpack.c.bf16 %v3215_v52, %v3212_v51 }
  0x1e   : > { %771 = vrot.lane.b32.xlu0 %v738_v34, %s3033_s23  ;;  %v3232_v59 = vld [vmem:[%s3146_s18 + $0x88] sm:$0xff]  ;;  %v421_v60 = vld [vmem:[%s3120_s29 + $0x80] sm:$0xff]  ;;  %v3245_v0 = vld [vmem:[%s3146_s18 + $0x90] sm:$0xff]  ;;  %v744_v2 = vpack.c.bf16 %v3226_v57, %v3218_v53  ;;  %v444_v3 = vpack.c.bf16 %v420_v55, %v419_v54 }
  0x1f   : > { %2723 = vmatmul.mubr.msk.bf16.gmra.mrb[4].mxu0 %vm475_vm1, %v440_v25  ;;  %775 = vrot.lane.b32.xlu1 %v740_v45, %s3033_s23  ;;  %v422_v61 = vld [vmem:[%s3120_s29 + $0x88] sm:$0xff]  ;;  %v3248_v1 = vld [vmem:[%s3146_s18 + $0x98] sm:$0xff]  ;;  %v745_v4 = vpack.c.bf16 %v3232_v59, %v3229_v58  ;;  %v3257_v6 = vld [vmem:[%s3146_s18 + $0xa0] sm:$0xff] }
  0x20   : > { %2726 = vmatprep.mubr.msk.bf16.mxu0 %vm475_vm1, %v441_v26  ;;  %983 = vmatpush1.bf16.msra.mxu1 %v2817_v29  ;;  %v445_v5 = vpack.c.bf16 %v422_v61, %v421_v60  ;;  %v3260_v7 = vld [vmem:[%s3146_s18 + $0xa8] sm:$0xff]  ;;  %v746_v8 = vpack.c.bf16 %v3248_v1, %v3245_v0  ;;  %v423_v9 = vld [vmem:[%s3120_s29 + $0x90] sm:$0xff]  ;;  %v3272_v11 = vld [vmem:[%s3146_s18 + $0xb8] sm:$0xff] }
  0x21   : > { %984 = vmatprep.subr.bf16.mxu1 %v2818_v63  ;;  %v3269_v10 = vld [vmem:[%s3146_s18 + $0xb0] sm:$0xff]  ;;  %v747_v12 = vpack.c.bf16 %v3260_v7, %v3257_v6  ;;  %v424_v13 = vld [vmem:[%s3120_s29 + $0x98] sm:$0xff]  ;;  %v3279_v14 = vld [vmem:[%s3146_s18 + $0xc0] sm:$0xff] }
  0x22   : > { %777 = vrot.lane.b32.xlu0 %v741_v49, %s3033_s23  ;;  %v3282_v15 = vld [vmem:[%s3146_s18 + $0xc8] sm:$0xff]  ;;  %v425_v16 = vld [vmem:[%s3120_s29 + $0xa0] sm:$0xff]  ;;  %v748_v18 = vpack.c.bf16 %v3272_v11, %v3269_v10  ;;  %v446_v19 = vpack.c.bf16 %v424_v13, %v423_v9  ;;  %v3291_v20 = vld [vmem:[%s3146_s18 + $0xd0] sm:$0xff]  ;;  %v3034_v9 = vmov 0  }
  0x23   : > { %779 = vrot.lane.b32.xlu1 %v742_v56, %s3033_s23  ;;  %v426_v17 = vld [vmem:[%s3120_s29 + $0xa8] sm:$0xff]  ;;  %v3294_v21 = vld [vmem:[%s3146_s18 + $0xd8] sm:$0xff]  ;;  %v749_v22 = vpack.c.bf16 %v3282_v15, %v3279_v14  ;;  %v427_v25 = vld [vmem:[%s3120_s29 + $0xb0] sm:$0xff]  ;;  %1006 = vmatprep.mubr.bf16.mxu1 %v3034_v9 }
  0x24   : > { %v447_v23 = vpack.c.bf16 %v426_v17, %v425_v16  ;;  %v750_v24 = vpack.c.bf16 %v3294_v21, %v3291_v20  ;;  %v428_v26 = vld [vmem:[%s3120_s29 + $0xb8] sm:$0xff]  ;;  %v429_v29 = vld [vmem:[%s3120_s29 + $0xc0] sm:$0xff]  ;;  %v430_v30 = vld [vmem:[%s3120_s29 + $0xc8] sm:$0xff] }
  0x25   : > { %v448_v33 = vpack.c.bf16 %v428_v26, %v427_v25  ;;  %v449_v34 = vpack.c.bf16 %v430_v30, %v429_v29  ;;  %v431_v38 = vld [vmem:[%s3120_s29 + $0xd0] sm:$0xff]  ;;  %v432_v39 = vld [vmem:[%s3120_s29 + $0xd8] sm:$0xff]  ;;  %v433_v40 = vld [vmem:[%s3120_s29 + $0xe0] sm:$0xff] }
  0x26   : > { %781 = vrot.lane.b32.xlu0 %v743_v62, %s3033_s23  ;;  %v434_v42 = vld [vmem:[%s3120_s29 + $0xe8] sm:$0xff]  ;;  %v450_v45 = vpack.c.bf16 %v432_v39, %v431_v38  ;;  %v435_v49 = vld [vmem:[%s3120_s29 + $0xf0] sm:$0xff]  ;;  %v404_v61 = vld [vmem:[%s3146_s18 + $0xf8] sm:$0xff] }
  0x27   : > { %2727 = vmatmul.mubr.msk.bf16.gmra.mrb[8].mxu0 %vm475_vm1, %v442_v46  ;;  %783 = vrot.lane.b32.xlu1 %v744_v2, %s3033_s23  ;;  %v451_v46 = vpack.c.bf16 %v434_v42, %v433_v40  ;;  %v2820_v55 = vld [vmem:[%s4447_s4 + $0x50] ss:$8 sps:$4 sm:$0xff]   ;;  %v2821_v56 = vld [vmem:[%s4447_s4 + $0x64] ss:$8 sps:$4 sm:$0xff]   ;;  %v2823_v62 = vld [vmem:[%s4447_s4 + $0x60] ss:$8 sps:$4 sm:$0xff]  }
  0x28   : > { %2730 = vmatprep.mubr.msk.bf16.mxu0 %vm475_vm1, %v443_v50  ;;  %v436_v50 = vld [vmem:[%s3120_s29 + $0xf8] sm:$0xff]  ;;  %985 = vmatpush1.bf16.msra.mxu1 %v2820_v55  ;;  %v403_v60 = vld [vmem:[%s3146_s18 + $0xf0] sm:$0xff]  ;;  %v3332_v2 = vld [vmem:[%s3146_s18 + $0xe0] sm:$0xff]  ;;  %s4298_s29 = scalar_lea.vmem %s4452_s9, %s3111_s24 }
  0x29   : > { %v452_v54 = vpack.c.bf16 %v436_v50, %v435_v49  ;;  %v752_v63 = vpack.c.bf16 %v404_v61, %v403_v60  ;;  %986 = vmatprep.subr.bf16.mxu1 %v2821_v56 }
  0x2a   : > { %785 = vrot.lane.b32.xlu0 %v745_v4, %s3033_s23 }
  0x2b   : > { %787 = vrot.lane.b32.xlu1 %v746_v8, %s3033_s23  ;;  %v2826_v8 = vld [vmem:[%s4447_s4 + $0x70] ss:$8 sps:$4 sm:$0xff]  }
  0x2c   : > { %987 = vmatpush1.bf16.msra.mxu1 %v2823_v62 }
  0x2e   : > { %789 = vrot.lane.b32.xlu0 %v747_v12, %s3033_s23 }
  0x2f   : > { %2731 = vmatmul.mubr.msk.bf16.gmra.mrb[12].mxu0 %vm475_vm1, %v444_v3  ;;  %791 = vrot.lane.b32.xlu1 %v748_v18, %s3033_s23  ;;  %v3335_v3 = vld [vmem:[%s3146_s18 + $0xe8] sm:$0xff] }
  0x30   : > { %2734 = vmatprep.mubr.msk.bf16.mxu0 %vm475_vm1, %v445_v5  ;;  %v751_v4 = vpack.c.bf16 %v3335_v3, %v3332_v2  ;;  %v2824_v5 = vld [vmem:[%s4447_s4 + $0x74] ss:$8 sps:$4 sm:$0xff]  }
  0x31   : > { %988 = vmatprep.subr.bf16.mxu1 %v2824_v5 }
  0x32   : > { %793 = vrot.lane.b32.xlu0 %v749_v22, %s3033_s23  ;;  %989 = vmatpush1.bf16.msra.mxu1 %v2826_v8 }
  0x33   : > { %795 = vrot.lane.b32.xlu1 %v750_v24, %s3033_s23 }
  0x36   : > { %797 = vrot.lane.b32.xlu0 %v751_v4, %s3033_s23 }
  0x37   : > { %2735 = vmatmul.mubr.msk.bf16.gmra.mrb[16].mxu0 %vm475_vm1, %v446_v19  ;;  %799 = vrot.lane.b32.xlu1 %v752_v63, %s3033_s23 }
  0x38   : > { %2738 = vmatprep.mubr.msk.bf16.mxu0 %vm475_vm1, %v447_v23 }
  0x3a   : > { %1807 = vrot.lane.b32.xlu0 %v3154_v27, %s3033_s23  ;;  %v3403_v27 = vld [vmem:[%s4446_s3] ss:$0 sm:$0xff] }
  0x3b   : > { %1809 = vrot.lane.b32.xlu1 %v3157_v28, %s3033_s23 }
  0x3e   : > { %1811 = vrot.lane.b32.xlu0 %v3165_v31, %s3033_s23 }
  0x3f   : > { %2739 = vmatmul.mubr.msk.bf16.gmra.mrb[20].mxu0 %vm475_vm1, %v448_v33  ;;  %1813 = vrot.lane.b32.xlu1 %v3168_v32, %s3033_s23 }
  0x40   : > { %2742 = vmatprep.mubr.msk.bf16.mxu0 %vm475_vm1, %v449_v34 }
  0x42   : > { %1815 = vrot.lane.b32.xlu0 %v3176_v35, %s3033_s23 }
  0x43   : > { %1817 = vrot.lane.b32.xlu1 %v3179_v36, %s3033_s23 }
  0x46   : > { %1819 = vrot.lane.b32.xlu0 %v3182_v37, %s3033_s23 }
  0x47   : > { %2743 = vmatmul.mubr.msk.bf16.gmra.mrb[24].mxu0 %vm475_vm1, %v450_v45  ;;  %1821 = vrot.lane.b32.xlu1 %v3190_v41, %s3033_s23 }
  0x48   : > { %2746 = vmatprep.mubr.msk.bf16.mxu0 %vm475_vm1, %v451_v46 }
  0x4a   : > { %1823 = vrot.lane.b32.xlu0 %v3194_v43, %s3033_s23 }
  0x4b   : > { %1825 = vrot.lane.b32.xlu1 %v3197_v44, %s3033_s23 }
  0x4e   : > { %1827 = vrot.lane.b32.xlu0 %v3204_v47, %s3033_s23 }
  0x4f   : > { %2747 = vmatmul.mubr.msk.bf16.gmra.mrb[28].mxu0 %vm475_vm1, %v452_v54  ;;  %1829 = vrot.lane.b32.xlu1 %v3207_v48, %s3033_s23 }
  0x52   : > { %1831 = vrot.lane.b32.xlu0 %v3212_v51, %s3033_s23 }
  0x53   : > { %1833 = vrot.lane.b32.xlu1 %v3215_v52, %s3033_s23 }
  0x56   : > { %1835 = vrot.lane.b32.xlu0 %v3218_v53, %s3033_s23 }
  0x57   : > { %1837 = vrot.lane.b32.xlu1 %v3226_v57, %s3033_s23 }
  0x5a   : > { %1839 = vrot.lane.b32.xlu0 %v3229_v58, %s3033_s23 }
  0x5b   : > { %1841 = vrot.lane.b32.xlu1 %v3232_v59, %s3033_s23 }
  0x5e   : > { %1843 = vrot.lane.b32.xlu0 %v3245_v0, %s3033_s23 }
  0x5f   : > { %1845 = vrot.lane.b32.xlu1 %v3248_v1, %s3033_s23 }
  0x62   : > { %1847 = vrot.lane.b32.xlu0 %v3257_v6, %s3033_s23 }
  0x63   : > { %1849 = vrot.lane.b32.xlu1 %v3260_v7, %s3033_s23 }
  0x66   : > { %1851 = vrot.lane.b32.xlu0 %v3269_v10, %s3033_s23 }
  0x67   : > { %1853 = vrot.lane.b32.xlu1 %v3272_v11, %s3033_s23 }
  0x6a   : > { %1855 = vrot.lane.b32.xlu0 %v3279_v14, %s3033_s23 }
  0x6b   : > { %1857 = vrot.lane.b32.xlu1 %v3282_v15, %s3033_s23 }
  0x8c   : > { %v770_v58 = vpop.permute.xlu0 %769 }
  0x8d   : > { %v774_v50 = vpop.permute.xlu1 %773 }
  0x90   : > { %v772_v17 = vpop.permute.xlu0 %771 }
  0xea   : > { %v2720_v28 = vpop.f32.mrb[0].mxu0 }
  0xeb   : > { %v571_v31 = vadd.f32 %v2720_v28, %v3403_v27  ;;  %v562_v32 = vpop.f32.mrb[1].mxu0 }
  0xec   : > { %v563_v35 = vadd.f32 %v3403_v27, %v562_v32  ;;  %v2721_v36 = vpop.f32.mrb[2].mxu0  ;;  %v776_v32 = vpop.permute.xlu1 %775 }
  0xed   : > { %v574_v37 = vadd.f32 %v2721_v36, %v3403_v27  ;;  %v565_v41 = vpop.f32.mrb[3].mxu0  ;;  %v691_v44 = vmax.f32 %v571_v31, 0.0 }
  0xee   : > { %v566_v43 = vadd.f32 %v3403_v27, %v565_v41  ;;  %v689_v48 = vmax.f32 %v563_v35, 0.0 }
  0xef   : > { %v692_v47 = vmax.f32 %v574_v37, 0.0 }
  0xf0   : > { %v690_v51 = vmax.f32 %v566_v43, 0.0 }
  0xf1   : > { %v722_v52 = vpack.c.bf16 %v692_v47, %v691_v44 }
  0xf2   : > { %v721_v53 = vpack.c.bf16 %v690_v51, %v689_v48  ;;  %v2724_v57 = vpop.f32.mrb[4].mxu0 }
  0xf3   : > { %v587_v59 = vadd.f32 %v2724_v57, %v3403_v27  ;;  %v578_v0 = vpop.f32.mrb[5].mxu0  ;;  %v808_v25 = vsel %vm801_vm2, %v722_v52, %v772_v17 }
  0xf4   : > { %v804_v1 = vsel %vm801_vm2, %v721_v53, %v770_v58  ;;  %v579_v6 = vadd.f32 %v3403_v27, %v578_v0  ;;  %v2725_v7 = vpop.f32.mrb[6].mxu0 }
  0xf5   : > { %1007 = vmatmul.mubr.bf16.vlgmr.msra.gmra.mrb[0].mxu1 %v804_v1  ;;  %v695_v10 = vmax.f32 %v587_v59, 0.0  ;;  %v590_v11 = vadd.f32 %v2725_v7, %v3403_v27  ;;  %v581_v12 = vpop.f32.mrb[7].mxu0  ;;  %v778_v1 = vpop.permute.xlu0 %777 }
  0xf6   : > { %v693_v13 = vmax.f32 %v579_v6, 0.0  ;;  %v582_v14 = vadd.f32 %v3403_v27, %v581_v12  ;;  %1016 = vmatprep.mubr.bf16.mxu1 %v3034_v9 }
  0xf7   : > { %v696_v15 = vmax.f32 %v590_v11, 0.0 }
  0xf8   : > { %v694_v16 = vmax.f32 %v582_v14, 0.0 }
  0xf9   : > { %v724_v18 = vpack.c.bf16 %v696_v15, %v695_v10 }
  0xfa   : > { %v723_v19 = vpack.c.bf16 %v694_v16, %v693_v13  ;;  %v2728_v22 = vpop.f32.mrb[8].mxu0 }
  0xfb   : > { %v603_v23 = vadd.f32 %v2728_v22, %v3403_v27  ;;  %v594_v24 = vpop.f32.mrb[9].mxu0  ;;  %v816_v44 = vsel %vm801_vm2, %v724_v18, %v776_v32 }
  0xfc   : > { %v595_v26 = vadd.f32 %v3403_v27, %v594_v24  ;;  %v2729_v29 = vpop.f32.mrb[10].mxu0  ;;  %v812_v56 = vsel %vm801_vm2, %v723_v19, %v774_v50 }
  0xfd   : > { %1017 = vmatmul.mubr.bf16.gmra.mrb[4].mxu1 %v808_v25  ;;  %v699_v30 = vmax.f32 %v603_v23, 0.0  ;;  %v606_v33 = vadd.f32 %v2729_v29, %v3403_v27  ;;  %v597_v34 = vpop.f32.mrb[11].mxu0  ;;  %v780_v25 = vpop.permute.xlu1 %779 }
  0xfe   : > { %1026 = vmatprep.mubr.bf16.mxu1 %v3034_v9  ;;  %v697_v38 = vmax.f32 %v595_v26, 0.0  ;;  %v598_v39 = vadd.f32 %v3403_v27, %v597_v34 }
  0xff   : > { %v700_v40 = vmax.f32 %v606_v33, 0.0 }
 0x100   : > { %v698_v42 = vmax.f32 %v598_v39, 0.0 }
 0x101   : > { %v726_v45 = vpack.c.bf16 %v700_v40, %v699_v30 }
 0x102   : > { %v725_v46 = vpack.c.bf16 %v698_v42, %v697_v38  ;;  %v2732_v49 = vpop.f32.mrb[12].mxu0 }
 0x103   : > { %v619_v54 = vadd.f32 %v2732_v49, %v3403_v27  ;;  %v610_v55 = vpop.f32.mrb[13].mxu0  ;;  %v824_v38 = vsel %vm801_vm2, %v726_v45, %v780_v25 }
 0x104   : > { %v611_v60 = vadd.f32 %v3403_v27, %v610_v55  ;;  %v2733_v61 = vpop.f32.mrb[14].mxu0  ;;  %v820_v13 = vsel %vm801_vm2, %v725_v46, %v778_v1 }
 0x105   : > { %1027 = vmatmul.mubr.bf16.gmra.mrb[8].mxu1 %v812_v56  ;;  %v703_v62 = vmax.f32 %v619_v54, 0.0  ;;  %v622_v63 = vadd.f32 %v2733_v61, %v3403_v27  ;;  %v613_v4 = vpop.f32.mrb[15].mxu0 }
 0x106   : > { %1036 = vmatprep.mubr.bf16.mxu1 %v3034_v9  ;;  %v701_v5 = vmax.f32 %v611_v60, 0.0  ;;  %v614_v8 = vadd.f32 %v3403_v27, %v613_v4  ;;  %v782_v60 = vpop.permute.xlu0 %781 }
 0x107   : > { %v704_v28 = vmax.f32 %v622_v63, 0.0 }
 0x108   : > { %v702_v31 = vmax.f32 %v614_v8, 0.0 }
 0x109   : > { %v3427_v35 = vpack.c.bf16 %v704_v28, %v703_v62 }
 0x10a   : > { %v727_v36 = vpack.c.bf16 %v702_v31, %v701_v5  ;;  %v2736_v37 = vpop.f32.mrb[16].mxu0 }
 0x10b   : > { %v635_v41 = vadd.f32 %v2736_v37, %v3403_v27  ;;  %v626_v43 = vpop.f32.mrb[17].mxu0 }
 0x10c   : > { %v627_v47 = vadd.f32 %v3403_v27, %v626_v43  ;;  %v2737_v48 = vpop.f32.mrb[18].mxu0  ;;  %v828_v5 = vsel %vm801_vm2, %v727_v36, %v782_v60 }
 0x10d   : > { %1037 = vmatmul.mubr.bf16.gmra.mrb[12].mxu1 %v816_v44  ;;  %v707_v51 = vmax.f32 %v635_v41, 0.0  ;;  %v638_v52 = vadd.f32 %v2737_v48, %v3403_v27  ;;  %v629_v53 = vpop.f32.mrb[19].mxu0  ;;  %v784_v48 = vpop.permute.xlu1 %783 }
 0x10e   : > { %1046 = vmatprep.mubr.bf16.mxu1 %v3034_v9  ;;  %v705_v57 = vmax.f32 %v627_v47, 0.0  ;;  %v630_v58 = vadd.f32 %v3403_v27, %v629_v53  ;;  %v832_v36 = vsel %vm801_vm2, %v3427_v35, %v784_v48  ;;  %v786_v53 = vpop.permute.xlu0 %785 }
 0x10f   : > { %v708_v59 = vmax.f32 %v638_v52, 0.0 }
 0x110   : > { %v706_v0 = vmax.f32 %v630_v58, 0.0 }
 0x111   : > { %v3435_v6 = vpack.c.bf16 %v708_v59, %v707_v51  ;;  %v788_v58 = vpop.permute.xlu1 %787 }
 0x112   : > { %v729_v7 = vpack.c.bf16 %v706_v0, %v705_v57  ;;  %v2740_v10 = vpop.f32.mrb[20].mxu0  ;;  %v790_v59 = vpop.permute.xlu0 %789 }
 0x113   : > { %v651_v11 = vadd.f32 %v2740_v10, %v3403_v27  ;;  %v642_v12 = vpop.f32.mrb[21].mxu0 }
 0x114   : > { %v643_v14 = vadd.f32 %v3403_v27, %v642_v12  ;;  %v2741_v15 = vpop.f32.mrb[22].mxu0  ;;  %v836_v57 = vsel %vm801_vm2, %v729_v7, %v786_v53 }
 0x115   : > { %1047 = vmatmul.mubr.bf16.gmra.mrb[16].mxu1 %v820_v13  ;;  %v711_v16 = vmax.f32 %v651_v11, 0.0  ;;  %v654_v17 = vadd.f32 %v2741_v15, %v3403_v27  ;;  %v645_v18 = vpop.f32.mrb[23].mxu0  ;;  %v792_v35 = vpop.permute.xlu1 %791 }
 0x116   : > { %1056 = vmatprep.mubr.bf16.mxu1 %v3034_v9  ;;  %v709_v19 = vmax.f32 %v643_v14, 0.0  ;;  %v646_v22 = vadd.f32 %v3403_v27, %v645_v18  ;;  %v794_v7 = vpop.permute.xlu0 %793 }
 0x117   : > { %v712_v23 = vmax.f32 %v654_v17, 0.0 }
 0x118   : > { %v710_v24 = vmax.f32 %v646_v22, 0.0 }
 0x119   : > { %v732_v26 = vpack.c.bf16 %v712_v23, %v711_v16  ;;  %v884_v16 = vlaneseq }
 0x11a   : > { %v731_v29 = vpack.c.bf16 %v710_v24, %v709_v19  ;;  %v2744_v30 = vpop.f32.mrb[24].mxu0  ;;  %v798_v12 = vpop.permute.xlu0 %797  ;;  %v3480_v19 = vld [vmem:[%s4448_s5] sm:$0x3] }
 0x11b   : > { %v667_v33 = vadd.f32 %v2744_v30, %v3403_v27  ;;  %v658_v34 = vpop.f32.mrb[25].mxu0  ;;  %v848_v1 = vsel %vm801_vm2, %v732_v26, %v792_v35  ;;  %v3474_v17 = vshrl.u32 %v884_v16, 7 }
 0x11c   : > { %v659_v39 = vadd.f32 %v3403_v27, %v658_v34  ;;  %v2745_v40 = vpop.f32.mrb[26].mxu0  ;;  %v844_v0 = vsel %vm801_vm2, %v731_v29, %v790_v59 }
 0x11d   : > { %1057 = vmatmul.mubr.bf16.gmra.mrb[20].mxu1 %v824_v38  ;;  %v715_v42 = vmax.f32 %v667_v33, 0.0  ;;  %v670_v46 = vadd.f32 %v2745_v40, %v3403_v27  ;;  %v661_v49 = vpop.f32.mrb[27].mxu0  ;;  %v890_v18 = vsub.s32 1, %v3474_v17 }
 0x11e   : > { %1066 = vmatprep.mubr.bf16.mxu1 %v3034_v9  ;;  %v713_v50 = vmax.f32 %v659_v39, 0.0  ;;  %v662_v54 = vadd.f32 %v3403_v27, %v661_v49 }
 0x11f   : > { %v716_v55 = vmax.f32 %v670_v46, 0.0  ;;  %v3483_v22 = vrot.slane %v3480_v19, %v890_v18 }
 0x120   : > { %v714_v56 = vmax.f32 %v662_v54, 0.0 }
 0x121   : > { %v734_v61 = vpack.c.bf16 %v716_v55, %v715_v42 }
 0x122   : > { %v733_v62 = vpack.c.bf16 %v714_v56, %v713_v50  ;;  %v2748_v63 = vpop.f32.mrb[28].mxu0 }
 0x123   : > { %v683_v45 = vadd.f32 %v2748_v63, %v3403_v27  ;;  %v674_v4 = vpop.f32.mrb[29].mxu0 }
 0x124   : > { %v675_v8 = vadd.f32 %v3403_v27, %v674_v4  ;;  %v2749_v28 = vpop.f32.mrb[30].mxu0  ;;  %v852_v10 = vsel %vm801_vm2, %v733_v62, %v794_v7  ;;  %v3590_v7 = vpop.permute.xlu0 %1807 }
 0x125   : > { %1067 = vmatmul.mubr.bf16.gmra.mrb[24].mxu1 %v828_v5  ;;  %v719_v31 = vmax.f32 %v683_v45, 0.0  ;;  %v686_v32 = vadd.f32 %v2749_v28, %v3403_v27  ;;  %v677_v37 = vpop.f32.mrb[31].mxu0  ;;  %4464 = vst [vmem:[#allocation2_spill] sm:$0xff] %v3590_v7 }
 0x126   : > { %1076 = vmatprep.mubr.bf16.mxu1 %v3034_v9  ;;  %v717_v41 = vmax.f32 %v675_v8, 0.0  ;;  %v678_v43 = vadd.f32 %v3403_v27, %v677_v37  ;;  %v840_v27 = vsel %vm801_vm2, %v3435_v6, %v788_v58  ;;  %v796_v6 = vpop.permute.xlu1 %795 }
 0x127   : > { %v720_v44 = vmax.f32 %v686_v32, 0.0  ;;  %v856_v11 = vsel %vm801_vm2, %v734_v61, %v796_v6 }
 0x128   : > { %v718_v47 = vmax.f32 %v678_v43, 0.0 }
 0x129   : > { %v736_v51 = vpack.c.bf16 %v720_v44, %v719_v31 }
 0x12a   : > { %v735_v52 = vpack.c.bf16 %v718_v47, %v717_v41  ;;  %v800_v14 = vpop.permute.xlu1 %799 }
 0x12b   : > { %v864_v15 = vsel %vm801_vm2, %v736_v51, %v800_v14 }
 0x12c   : > { %v860_v13 = vsel %vm801_vm2, %v735_v52, %v798_v12 }
 0x12d   : > { %1077 = vmatmul.mubr.bf16.gmra.mrb[28].mxu1 %v832_v36 }
 0x12e   : > { %1086 = vmatprep.mubr.bf16.mxu1 %v3034_v9  ;;  %v3597_v6 = vpop.permute.xlu1 %1809 }
 0x12f   : > { %4465 = vst [vmem:[#allocation3_spill] sm:$0xff] %v3597_v6 }
 0x132   : > { %v3605_v14 = vpop.permute.xlu1 %1813 }
 0x133   : > { %4467 = vst [vmem:[#allocation5_spill] sm:$0xff] %v3605_v14 }
 0x135   : > { %1087 = vmatmul.mubr.bf16.gmra.mrb[32].mxu1 %v836_v57 }
 0x136   : > { %1096 = vmatprep.mubr.bf16.mxu1 %v3034_v9 }
 0x13d   : > { %1097 = vmatmul.mubr.bf16.gmra.mrb[36].mxu1 %v840_v27 }
 0x13e   : > { %1106 = vmatprep.mubr.bf16.mxu1 %v3034_v9 }
 0x145   : > { %1107 = vmatmul.mubr.bf16.gmra.mrb[40].mxu1 %v844_v0 }
 0x146   : > { %1116 = vmatprep.mubr.bf16.mxu1 %v3034_v9 }
 0x14d   : > { %1117 = vmatmul.mubr.bf16.gmra.mrb[44].mxu1 %v848_v1 }
 0x14e   : > { %1126 = vmatprep.mubr.bf16.mxu1 %v3034_v9 }
 0x155   : > { %1127 = vmatmul.mubr.bf16.gmra.mrb[48].mxu1 %v852_v10 }
 0x156   : > { %1136 = vmatprep.mubr.bf16.mxu1 %v3034_v9 }
 0x15d   : > { %1137 = vmatmul.mubr.bf16.gmra.mrb[52].mxu1 %v856_v11  ;;  %v3601_v11 = vpop.permute.xlu0 %1811 }
 0x15e   : > { %1146 = vmatprep.mubr.bf16.mxu1 %v3034_v9  ;;  %4466 = vst [vmem:[#allocation4_spill] sm:$0xff] %v3601_v11 }
 0x165   : > { %1147 = vmatmul.mubr.bf16.gmra.mrb[56].mxu1 %v860_v13 }
 0x166   : > { %1156 = vmatprep.mubr.bf16.mxu1 %v3034_v9 }
 0x16d   : > { %1157 = vmatmul.mubr.bf16.gmra.mrb[60].mxu1 %v864_v15 }
 0x1c8   : > { %v3485_v23 = vpop.f32.mrb[0].mxu1 }
 0x1c9   : > { %v1010_v9 = vpop.f32.mrb[1].mxu1 }
 0x1ca   : > { %v3488_v24 = vadd.f32 %v1010_v9, %v3483_v22  ;;  %v3490_v25 = vpop.f32.mrb[2].mxu1  ;;  %v3612_v9 = vpop.permute.xlu0 %1815 }
 0x1cb   : > { %v1014_v26 = vpop.f32.mrb[3].mxu1  ;;  %4468 = vst [vmem:[#allocation6_spill] sm:$0xff] %v3612_v9 }
 0x1cc   : > { %v3493_v29 = vadd.f32 %v1014_v26, %v3483_v22  ;;  %1391 = vrot.lane.b32.xlu0 %v3488_v24, %s3033_s23 }
 0x1ce   : > { %1393 = vrot.lane.b32.xlu1 %v3493_v29, %s3033_s23 }
 0x1d0   : > { %v3499_v30 = vpop.f32.mrb[4].mxu1 }
 0x1d1   : > { %v1020_v33 = vpop.f32.mrb[5].mxu1 }
 0x1d2   : > { %v3502_v34 = vadd.f32 %v1020_v33, %v3483_v22  ;;  %v3504_v38 = vpop.f32.mrb[6].mxu1  ;;  %v3619_v33 = vpop.permute.xlu1 %1817 }
 0x1d3   : > { %v1024_v39 = vpop.f32.mrb[7].mxu1  ;;  %4469 = vst [vmem:[#allocation7_spill] sm:$0xff] %v3619_v33 }
 0x1d4   : > { %v3507_v40 = vadd.f32 %v1024_v39, %v3483_v22  ;;  %1395 = vrot.lane.b32.xlu0 %v3502_v34, %s3033_s23  ;;  %v3623_v39 = vpop.permute.xlu0 %1819 }
 0x1d5   : > { %4470 = vst [vmem:[#allocation8_spill] sm:$0xff] %v3623_v39 }
 0x1d6   : > { %1397 = vrot.lane.b32.xlu1 %v3507_v40, %s3033_s23 }
 0x1d8   : > { %v3513_v42 = vpop.f32.mrb[8].mxu1 }
 0x1d9   : > { %v1030_v46 = vpop.f32.mrb[9].mxu1 }
 0x1da   : > { %v3516_v49 = vadd.f32 %v1030_v46, %v3483_v22  ;;  %v3518_v50 = vpop.f32.mrb[10].mxu1 }
 0x1db   : > { %v1034_v54 = vpop.f32.mrb[11].mxu1 }
 0x1dc   : > { %v3521_v55 = vadd.f32 %v1034_v54, %v3483_v22  ;;  %1399 = vrot.lane.b32.xlu0 %v3516_v49, %s3033_s23 }
 0x1de   : > { %1401 = vrot.lane.b32.xlu1 %v3521_v55, %s3033_s23 }
 0x1e0   : > { %v3527_v56 = vpop.f32.mrb[12].mxu1 }
 0x1e1   : > { %v1040_v60 = vpop.f32.mrb[13].mxu1 }
 0x1e2   : > { %v3530_v61 = vadd.f32 %v1040_v60, %v3483_v22  ;;  %v3532_v62 = vpop.f32.mrb[14].mxu1  ;;  %v3627_v60 = vpop.permute.xlu1 %1821 }
 0x1e3   : > { %v1044_v63 = vpop.f32.mrb[15].mxu1  ;;  %4471 = vst [vmem:[#allocation9_spill] sm:$0xff] %v3627_v60 }
 0x1e4   : > { %v3535_v45 = vadd.f32 %v1044_v63, %v3483_v22  ;;  %1403 = vrot.lane.b32.xlu0 %v3530_v61, %s3033_s23 }
 0x1e6   : > { %1405 = vrot.lane.b32.xlu1 %v3535_v45, %s3033_s23 }
 0x1e8   : > { %v3541_v4 = vpop.f32.mrb[16].mxu1 }
 0x1e9   : > { %v1050_v5 = vpop.f32.mrb[17].mxu1 }
 0x1ea   : > { %v3544_v8 = vadd.f32 %v1050_v5, %v3483_v22  ;;  %v3546_v28 = vpop.f32.mrb[18].mxu1 }
 0x1eb   : > { %v1054_v31 = vpop.f32.mrb[19].mxu1 }
 0x1ec   : > { %v3549_v32 = vadd.f32 %v1054_v31, %v3483_v22  ;;  %1407 = vrot.lane.b32.xlu0 %v3544_v8, %s3033_s23  ;;  %v886_v31 = vsub.s32 0, %v3474_v17 }
 0x1ee   : > { %1409 = vrot.lane.b32.xlu1 %v3549_v32, %s3033_s23 }
 0x1f0   : > { %v3555_v37 = vpop.f32.mrb[20].mxu1 }
 0x1f1   : > { %v1060_v41 = vpop.f32.mrb[21].mxu1 }
 0x1f2   : > { %v3558_v43 = vadd.f32 %v1060_v41, %v3483_v22  ;;  %v3560_v44 = vpop.f32.mrb[22].mxu1 }
 0x1f3   : > { %v1064_v47 = vpop.f32.mrb[23].mxu1 }
 0x1f4   : > { %v3563_v48 = vadd.f32 %v1064_v47, %v3483_v22  ;;  %1411 = vrot.lane.b32.xlu0 %v3558_v43, %s3033_s23  ;;  %v3635_v47 = vpop.permute.xlu0 %1823 }
 0x1f5   : > { %4472 = vst [vmem:[#allocation10_spill] sm:$0xff] %v3635_v47 }
 0x1f6   : > { %1413 = vrot.lane.b32.xlu1 %v3563_v48, %s3033_s23 }
 0x1f8   : > { %v3569_v51 = vpop.f32.mrb[24].mxu1 }
 0x1f9   : > { %v1070_v52 = vpop.f32.mrb[25].mxu1 }
 0x1fa   : > { %v3572_v36 = vadd.f32 %v1070_v52, %v3483_v22  ;;  %v3574_v53 = vpop.f32.mrb[26].mxu1 }
 0x1fb   : > { %v1074_v57 = vpop.f32.mrb[27].mxu1 }
 0x1fc   : > { %v3577_v58 = vadd.f32 %v1074_v57, %v3483_v22  ;;  %1415 = vrot.lane.b32.xlu0 %v3572_v36, %s3033_s23  ;;  %v3642_v57 = vpop.permute.xlu1 %1825 }
 0x1fd   : > { %4473 = vst [vmem:[#allocation11_spill] sm:$0xff] %v3642_v57 }
 0x1fe   : > { %1417 = vrot.lane.b32.xlu1 %v3577_v58, %s3033_s23 }
 0x200   : > { %v3583_v27 = vpop.f32.mrb[28].mxu1 }
 0x201   : > { %v1080_v59 = vpop.f32.mrb[29].mxu1 }
 0x202   : > { %v3586_v0 = vadd.f32 %v1080_v59, %v3483_v22  ;;  %v3588_v35 = vpop.f32.mrb[30].mxu1  ;;  %v3647_v59 = vrot.slane %v3480_v19, %v886_v31 }
 0x203   : > { %v1084_v1 = vpop.f32.mrb[31].mxu1 }
 0x204   : > { %v3593_v10 = vadd.f32 %v1084_v1, %v3483_v22  ;;  %1419 = vrot.lane.b32.xlu0 %v3586_v0, %s3033_s23  ;;  %v3649_v1 = vpop.permute.xlu0 %1827  ;;  %v1009_v57 = vadd.f32 %v3485_v23, %v3647_v59  ;;  %v1013_v31 = vadd.f32 %v3490_v25, %v3647_v59  ;;  %v1019_v25 = vadd.f32 %v3499_v30, %v3647_v59 }
 0x205   : > { %4474 = vst [vmem:[#allocation12_spill] sm:$0xff] %v3649_v1 }
 0x206   : > { %1421 = vrot.lane.b32.xlu1 %v3593_v10, %s3033_s23 }
 0x208   : > { %v3603_v12 = vpop.f32.mrb[32].mxu1  ;;  %v3662_v60 = vpop.permute.xlu0 %1831 }
 0x209   : > { %v1090_v13 = vpop.f32.mrb[33].mxu1  ;;  %4476 = vst [vmem:[#allocation14_spill] sm:$0xff] %v3662_v60  ;;  %v2622_v60 = vmul.f32 -1.442695, %v1013_v31 }
 0x20a   : > { %v3608_v15 = vadd.f32 %v1090_v13, %v3483_v22  ;;  %v3610_v16 = vpop.f32.mrb[34].mxu1 }
 0x20b   : > { %v1094_v18 = vpop.f32.mrb[35].mxu1 }
 0x20c   : > { %v3615_v26 = vadd.f32 %v1094_v18, %v3483_v22  ;;  %1423 = vrot.lane.b32.xlu0 %v3608_v15, %s3033_s23  ;;  %v3653_v18 = vpop.permute.xlu1 %1829  ;;  %v3675_v1 = vpop.permute.xlu0 %1835 }
 0x20d   : > { %4475 = vst [vmem:[#allocation13_spill] sm:$0xff] %v3653_v18  ;;  %4479 = vst [vmem:[#allocation17_spill] sm:$0xff] %v3675_v1 }
 0x20e   : > { %1425 = vrot.lane.b32.xlu1 %v3615_v26, %s3033_s23 }
 0x210   : > { %v3625_v46 = vpop.f32.mrb[36].mxu1  ;;  %v3671_v18 = vpop.permute.xlu1 %1833 }
 0x211   : > { %v1100_v54 = vpop.f32.mrb[37].mxu1  ;;  %4478 = vst [vmem:[#allocation16_spill] sm:$0xff] %v3671_v18  ;;  %v3691_v1 = vpop.permute.xlu0 %1839 }
 0x212   : > { %v3630_v63 = vadd.f32 %v1100_v54, %v3483_v22  ;;  %v3632_v5 = vpop.f32.mrb[38].mxu1  ;;  %4483 = vst [vmem:[#allocation21_spill] sm:$0xff] %v3691_v1  ;;  %v1029_v1 = vadd.f32 %v3513_v42, %v3647_v59  ;;  %v1033_v42 = vadd.f32 %v3518_v50, %v3647_v59 }
 0x213   : > { %v1104_v41 = vpop.f32.mrb[39].mxu1 }
 0x214   : > { %v3638_v52 = vadd.f32 %v1104_v41, %v3483_v22  ;;  %1427 = vrot.lane.b32.xlu0 %v3630_v63, %s3033_s23  ;;  %v2626_v6 = vmul.f32 -1.442695, %v1033_v42 }
 0x216   : > { %1429 = vrot.lane.b32.xlu1 %v3638_v52, %s3033_s23 }
 0x218   : > { %v3651_v17 = vpop.f32.mrb[40].mxu1 }
 0x219   : > { %v1110_v13 = vpop.f32.mrb[41].mxu1 }
 0x21a   : > { %v3656_v54 = vadd.f32 %v1110_v13, %v3483_v22  ;;  %v3658_v41 = vpop.f32.mrb[42].mxu1  ;;  %v2621_v13 = vmul.f32 -1.442695, %v1009_v57 }
 0x21b   : > { %v1114_v47 = vpop.f32.mrb[43].mxu1 }
 0x21c   : > { %v3665_v19 = vadd.f32 %v1114_v47, %v3483_v22  ;;  %1431 = vrot.lane.b32.xlu0 %v3656_v54, %s3033_s23  ;;  %v3679_v47 = vpop.permute.xlu1 %1837  ;;  %2831 = vpow2.f32 %v2621_v13  ;;  %v2623_v13 = vmul.f32 -1.442695, %v1019_v25 }
 0x21d   : > { %4480 = vst [vmem:[#allocation18_spill] sm:$0xff] %v3679_v47  ;;  %2833 = vpow2.f32 %v2622_v60  ;;  %v3703_v47 = vpop.permute.xlu0 %1843 }
 0x21e   : > { %4477 = vst [vmem:[#allocation15_spill] sm:$0xff] %v3665_v19  ;;  %1433 = vrot.lane.b32.xlu1 %v3665_v19, %s3033_s23  ;;  %4485 = vst [vmem:[#allocation23_spill] sm:$0xff] %v3703_v47  ;;  %2835 = vpow2.f32 %v2623_v13 }
 0x220   : > { %v3677_v23 = vpop.f32.mrb[44].mxu1  ;;  %v3697_v31 = vpop.permute.xlu1 %1841 }
 0x221   : > { %v1120_v39 = vpop.f32.mrb[45].mxu1  ;;  %4484 = vst [vmem:[#allocation22_spill] sm:$0xff] %v3697_v31 }
 0x222   : > { %v3682_v33 = vadd.f32 %v1120_v39, %v3483_v22  ;;  %v3684_v9 = vpop.f32.mrb[46].mxu1  ;;  %v1023_v39 = vadd.f32 %v3504_v38, %v3647_v59 }
 0x223   : > { %v1124_v18 = vpop.f32.mrb[47].mxu1 }
 0x224   : > { %4481 = vst [vmem:[#allocation19_spill] sm:$0xff] %v3682_v33  ;;  %v3689_v57 = vadd.f32 %v1124_v18, %v3483_v22  ;;  %1435 = vrot.lane.b32.xlu0 %v3682_v33, %s3033_s23  ;;  %v2624_v18 = vmul.f32 -1.442695, %v1023_v39  ;;  %v3712_v38 = vpop.permute.xlu1 %1845  ;;  %v3719_v39 = vpop.permute.xlu0 %1847 }
 0x225   : > { %4487 = vst [vmem:[#allocation25_spill] sm:$0xff] %v3712_v38  ;;  %4489 = vst [vmem:[#allocation27_spill] sm:$0xff] %v3719_v39 }
 0x226   : > { %4482 = vst [vmem:[#allocation20_spill] sm:$0xff] %v3689_v57  ;;  %1437 = vrot.lane.b32.xlu1 %v3689_v57, %s3033_s23  ;;  %v2832_v47 = vpop.eup %2831  ;;  %2837 = vpow2.f32 %v2624_v18 }
 0x227   : > { %v2834_v13 = vpop.eup %2833  ;;  %v1263_v7 = vadd.f32 1.0, %v2832_v47 }
 0x228   : > { %v3701_v30 = vpop.f32.mrb[48].mxu1  ;;  %v3725_v38 = vpop.permute.xlu1 %1849  ;;  %v1264_v57 = vadd.f32 1.0, %v2834_v13 }
 0x229   : > { %v1130_v14 = vpop.f32.mrb[49].mxu1  ;;  %4490 = vst [vmem:[#allocation28_spill] sm:$0xff] %v3725_v38 }
 0x22a   : > { %v3708_v60 = vadd.f32 %v1130_v14, %v3483_v22  ;;  %v3710_v11 = vpop.f32.mrb[50].mxu1  ;;  %v2625_v14 = vmul.f32 -1.442695, %v1029_v1  ;;  %v3736_v1 = vpop.permute.xlu0 %1851 }
 0x22b   : > { %v1134_v31 = vpop.f32.mrb[51].mxu1  ;;  %4492 = vst [vmem:[#allocation30_spill] sm:$0xff] %v3736_v1 }
 0x22c   : > { %4486 = vst [vmem:[#allocation24_spill] sm:$0xff] %v3708_v60  ;;  %v3715_v25 = vadd.f32 %v1134_v31, %v3483_v22  ;;  %1439 = vrot.lane.b32.xlu0 %v3708_v60, %s3033_s23  ;;  %v1039_v60 = vadd.f32 %v3527_v56, %v3647_v59  ;;  %2839 = vpow2.f32 %v2625_v14  ;;  %v3743_v42 = vpop.permute.xlu1 %1853  ;;  %v2836_v56 = vpop.eup %2835 }
 0x22d   : > { %2841 = vrcp.f32 %v1263_v7  ;;  %4494 = vst [vmem:[#allocation32_spill] sm:$0xff] %v3743_v42  ;;  %v1265_v7 = vadd.f32 1.0, %v2836_v56  ;;  %v1049_v42 = vadd.f32 %v3541_v4, %v3647_v59 }
 0x22e   : > { %4488 = vst [vmem:[#allocation26_spill] sm:$0xff] %v3715_v25  ;;  %1441 = vrot.lane.b32.xlu1 %v3715_v25, %s3033_s23  ;;  %2843 = vpow2.f32 %v2626_v6  ;;  %v2627_v14 = vmul.f32 -1.442695, %v1039_v60 }
 0x22f   : > { %2845 = vrcp.f32 %v1264_v57  ;;  %v2629_v4 = vmul.f32 -1.442695, %v1049_v42 }
 0x230   : > { %v3727_v31 = vpop.f32.mrb[52].mxu1  ;;  %v2838_v13 = vpop.eup %2837  ;;  %2847 = vpow2.f32 %v2627_v14 }
 0x231   : > { %v1140_v39 = vpop.f32.mrb[53].mxu1  ;;  %v1266_v60 = vadd.f32 1.0, %v2838_v13  ;;  %v3760_v57 = vpop.permute.xlu1 %1857  ;;  %2849 = vrcp.f32 %v1265_v7 }
 0x232   : > { %v3732_v18 = vadd.f32 %v1140_v39, %v3483_v22  ;;  %v3734_v50 = vpop.f32.mrb[54].mxu1  ;;  %v1043_v39 = vadd.f32 %v3532_v62, %v3647_v59  ;;  %4497 = vst [vmem:[#allocation35_spill] sm:$0xff] %v3760_v57 }
 0x233   : > { %v1144_v25 = vpop.f32.mrb[55].mxu1 }
 0x234   : > { %4491 = vst [vmem:[#allocation29_spill] sm:$0xff] %v3732_v18  ;;  %v3739_v47 = vadd.f32 %v1144_v25, %v3483_v22  ;;  %1443 = vrot.lane.b32.xlu0 %v3732_v18, %s3033_s23  ;;  %v3751_v25 = vpop.permute.xlu0 %1855  ;;  %v2628_v38 = vmul.f32 -1.442695, %v1043_v39 }
 0x235   : > { %4495 = vst [vmem:[#allocation33_spill] sm:$0xff] %v3751_v25  ;;  %v1053_v25 = vadd.f32 %v3546_v28, %v3647_v59 }
 0x236   : > { %4493 = vst [vmem:[#allocation31_spill] sm:$0xff] %v3739_v47  ;;  %1445 = vrot.lane.b32.xlu1 %v3739_v47, %s3033_s23  ;;  %v2840_v56 = vpop.eup %2839  ;;  %2851 = vpow2.f32 %v2628_v38  ;;  %v1059_v38 = vadd.f32 %v3555_v37, %v3647_v59  ;;  %v1063_v37 = vadd.f32 %v3560_v44, %v3647_v59 }
 0x237   : > { %v3769_v39 = vpop.eup %2841  ;;  %2853 = vrcp.f32 %v1266_v60  ;;  %v1267_v7 = vadd.f32 1.0, %v2840_v56 }
 0x238   : > { %v3749_v1 = vpop.f32.mrb[56].mxu1  ;;  %4499 = vst [vmem:[#allocation37_spill] sm:$0xff] %v3769_v39  ;;  %2855 = vpow2.f32 %v2629_v4 }
 0x239   : > { %v1150_v6 = vpop.f32.mrb[57].mxu1  ;;  %2857 = vrcp.f32 %v1267_v7 }
 0x23a   : > { %v3756_v18 = vadd.f32 %v1150_v6, %v3483_v22  ;;  %v3758_v62 = vpop.f32.mrb[58].mxu1  ;;  %v2844_v6 = vpop.eup %2843 }
 0x23b   : > { %v1154_v47 = vpop.f32.mrb[59].mxu1  ;;  %v3774_v28 = vpop.eup %2845 }
 0x23c   : > { %4496 = vst [vmem:[#allocation34_spill] sm:$0xff] %v3756_v18  ;;  %v3765_v14 = vadd.f32 %v1154_v47, %v3483_v22  ;;  %1447 = vrot.lane.b32.xlu0 %v3756_v18, %s3033_s23  ;;  %v2630_v47 = vmul.f32 -1.442695, %v1053_v25  ;;  %v1268_v18 = vadd.f32 1.0, %v2844_v6 }
 0x23e   : > { %4498 = vst [vmem:[#allocation36_spill] sm:$0xff] %v3765_v14  ;;  %1449 = vrot.lane.b32.xlu1 %v3765_v14, %s3033_s23  ;;  %v1392_v13 = vpop.permute.xlu0 %1391  ;;  %2859 = vpow2.f32 %v2630_v47 }
 0x23f   : > { %v1487_v57 = vmul.f32 %v3769_v39, %v1392_v13  ;;  %v2848_v39 = vpop.eup %2847 }
 0x240   : > { %v3776_v33 = vpop.f32.mrb[60].mxu1  ;;  %v1394_v19 = vpop.permute.xlu1 %1393 }
 0x241   : > { %4500 = vst [vmem:[#allocation38_spill] sm:$0xff] %v3776_v33  ;;  %v1519_v42 = vadd.f32 %v1487_v57, %v3488_v24  ;;  %v1488_v60 = vmul.f32 %v3774_v28, %v1394_v19  ;;  %v1160_v14 = vpop.f32.mrb[61].mxu1  ;;  %v2631_v19 = vmul.f32 -1.442695, %v1059_v38  ;;  %v3795_v57 = vpop.eup %2849 }
 0x242   : > { %v3783_v56 = vadd.f32 %v1160_v14, %v3483_v22  ;;  %v3785_v13 = vpop.f32.mrb[62].mxu1  ;;  %v1269_v14 = vadd.f32 1.0, %v2848_v39  ;;  %v2852_v4 = vpop.eup %2851 }
 0x243   : > { %v1520_v25 = vadd.f32 %v1488_v60, %v3493_v29  ;;  %v1164_v33 = vpop.f32.mrb[63].mxu1  ;;  %2861 = vtanh.f32 %v1519_v42  ;;  %v3800_v6 = vpop.eup %2853  ;;  %v1270_v47 = vadd.f32 1.0, %v2852_v4 }
 0x244   : > { %v3791_v24 = vadd.f32 %v1164_v33, %v3483_v22  ;;  %1451 = vrot.lane.b32.xlu0 %v3783_v56, %s3033_s23  ;;  %2863 = vrcp.f32 %v1268_v18  ;;  %v2632_v22 = vmul.f32 -1.442695, %v1063_v37  ;;  %v1069_v18 = vadd.f32 %v3569_v51, %v3647_v59  ;;  %v2856_v38 = vpop.eup %2855 }
 0x245   : > { %2865 = vtanh.f32 %v1520_v25  ;;  %v3815_v51 = vpop.eup %2857  ;;  %v1271_v25 = vadd.f32 1.0, %v2856_v38 }
 0x246   : > { %1453 = vrot.lane.b32.xlu1 %v3791_v24, %s3033_s23  ;;  %v1396_v29 = vpop.permute.xlu0 %1395  ;;  %2867 = vpow2.f32 %v2631_v19 }
 0x247   : > { %v1489_v44 = vmul.f32 %v3795_v57, %v1396_v29  ;;  %2869 = vrcp.f32 %v1269_v14  ;;  %v1079_v29 = vadd.f32 %v3583_v27, %v3647_v59 }
 0x248   : > { %v1398_v33 = vpop.permute.xlu1 %1397  ;;  %1859 = vrot.lane.b32.xlu0 %v3291_v20, %s3033_s23  ;;  %v1073_v20 = vadd.f32 %v3574_v53, %v3647_v59  ;;  %v2860_v60 = vpop.eup %2859 }
 0x249   : > { %v1521_v39 = vadd.f32 %v1489_v44, %v3502_v34  ;;  %v1490_v7 = vmul.f32 %v3800_v6, %v1398_v33  ;;  %v2633_v34 = vmul.f32 -1.442695, %v1069_v18  ;;  %v2635_v27 = vmul.f32 -1.442695, %v1079_v29 }
 0x24a   : > { %1861 = vrot.lane.b32.xlu1 %v3294_v21, %s3033_s23  ;;  %v2634_v53 = vmul.f32 -1.442695, %v1073_v20 }
 0x24b   : > { %2871 = vtanh.f32 %v1521_v39  ;;  %v1522_v42 = vadd.f32 %v1490_v7, %v3507_v40  ;;  %v1083_v39 = vadd.f32 %v3588_v35, %v3647_v59  ;;  %v1089_v35 = vadd.f32 %v3603_v12, %v3647_v59 }
 0x24c   : > { %2873 = vpow2.f32 %v2632_v22  ;;  %1863 = vrot.lane.b32.xlu0 %v3332_v2, %s3033_s23 }
 0x24d   : > { %2875 = vtanh.f32 %v1522_v42  ;;  %v2862_v37 = vpop.eup %2861 }
 0x24e   : > { %2877 = vrcp.f32 %v1270_v47  ;;  %1865 = vrot.lane.b32.xlu1 %v3335_v3, %s3033_s23  ;;  %v1400_v21 = vpop.permute.xlu0 %1399  ;;  %v3820_v19 = vpop.eup %2863  ;;  %v1272_v3 = vadd.f32 1.0, %v2860_v60 }
 0x24f   : > { %v1491_v40 = vmul.f32 %v3815_v51, %v1400_v21  ;;  %v2866_v2 = vpop.eup %2865  ;;  %2879 = vpow2.f32 %v2633_v34 }
 0x250   : > { %v1402_v14 = vpop.permute.xlu1 %1401  ;;  %1647 = vrot.lane.b32.xlu0 %v2862_v37, %s3033_s23  ;;  %2881 = vrcp.f32 %v1271_v25  ;;  %v2868_v22 = vpop.eup %2867 }
 0x251   : > { %v1523_v4 = vadd.f32 %v1491_v40, %v3516_v49  ;;  %v1492_v44 = vmul.f32 %v3820_v19, %v1402_v14  ;;  %v3829_v18 = vpop.eup %2869  ;;  %v1273_v47 = vadd.f32 1.0, %v2868_v22 }
 0x252   : > { %1649 = vrot.lane.b32.xlu1 %v2866_v2, %s3033_s23  ;;  %v1093_v2 = vadd.f32 %v3610_v16, %v3647_v59  ;;  %v1099_v16 = vadd.f32 %v3625_v46, %v3647_v59 }
 0x253   : > { %2883 = vtanh.f32 %v1523_v4  ;;  %v1524_v33 = vadd.f32 %v1492_v44, %v3521_v55  ;;  %v2636_v55 = vmul.f32 -1.442695, %v1083_v39  ;;  %v2637_v4 = vmul.f32 -1.442695, %v1089_v35 }
 0x254   : > { %2885 = vpow2.f32 %v2634_v53 }
 0x255   : > { %v2872_v7 = vpop.eup %2871  ;;  %2887 = vtanh.f32 %v1524_v33 }
 0x256   : > { %v2874_v49 = vpop.eup %2873  ;;  %2889 = vrcp.f32 %v1272_v3  ;;  %v1404_v38 = vpop.permute.xlu0 %1403  ;;  %1651 = vrot.lane.b32.xlu0 %v2872_v7, %s3033_s23 }
 0x257   : > { %v2876_v42 = vpop.eup %2875  ;;  %v1493_v20 = vmul.f32 %v3829_v18, %v1404_v38  ;;  %2891 = vpow2.f32 %v2635_v27  ;;  %v1274_v37 = vadd.f32 1.0, %v2874_v49 }
 0x258   : > { %v3835_v34 = vpop.eup %2877  ;;  %v1406_v60 = vpop.permute.xlu1 %1405  ;;  %1653 = vrot.lane.b32.xlu1 %v2876_v42, %s3033_s23  ;;  %2893 = vrcp.f32 %v1273_v47 }
 0x259   : > { %v1525_v25 = vadd.f32 %v1493_v20, %v3530_v61  ;;  %v1494_v21 = vmul.f32 %v3835_v34, %v1406_v60  ;;  %v2880_v40 = vpop.eup %2879  ;;  %v1103_v20 = vadd.f32 %v3632_v5, %v3647_v59  ;;  %v2639_v60 = vmul.f32 -1.442695, %v1099_v16 }
 0x25a   : > { %v3843_v14 = vpop.eup %2881  ;;  %v1275_v61 = vadd.f32 1.0, %v2880_v40  ;;  %v1109_v5 = vadd.f32 %v3651_v17, %v3647_v59 }
 0x25b   : > { %2895 = vtanh.f32 %v1525_v25  ;;  %v1526_v53 = vadd.f32 %v1494_v21, %v3535_v45  ;;  %v2638_v45 = vmul.f32 -1.442695, %v1093_v2 }
 0x25c   : > { %2897 = vpow2.f32 %v2636_v55 }
 0x25d   : > { %v2884_v29 = vpop.eup %2883  ;;  %2899 = vtanh.f32 %v1526_v53 }
 0x25e   : > { %v2886_v12 = vpop.eup %2885  ;;  %2901 = vrcp.f32 %v1274_v37  ;;  %v1408_v44 = vpop.permute.xlu0 %1407  ;;  %1655 = vrot.lane.b32.xlu0 %v2884_v29, %s3033_s23 }
 0x25f   : > { %v2888_v3 = vpop.eup %2887  ;;  %v1495_v22 = vmul.f32 %v3843_v14, %v1408_v44  ;;  %2903 = vpow2.f32 %v2637_v4  ;;  %v1276_v49 = vadd.f32 1.0, %v2886_v12  ;;  %v1113_v44 = vadd.f32 %v3658_v41, %v3647_v59 }
 0x260   : > { %v3849_v33 = vpop.eup %2889  ;;  %v1410_v39 = vpop.permute.xlu1 %1409  ;;  %1657 = vrot.lane.b32.xlu1 %v2888_v3, %s3033_s23  ;;  %2905 = vrcp.f32 %v1275_v61  ;;  %v1119_v41 = vadd.f32 %v3677_v23, %v3647_v59 }
 0x261   : > { %v1527_v7 = vadd.f32 %v1495_v22, %v3544_v8  ;;  %v1496_v27 = vmul.f32 %v3849_v33, %v1410_v39  ;;  %v2892_v47 = vpop.eup %2891  ;;  %v2641_v22 = vmul.f32 -1.442695, %v1109_v5  ;;  %v1129_v5 = vadd.f32 %v3701_v30, %v3647_v59 }
 0x262   : > { %v3857_v42 = vpop.eup %2893  ;;  %v1277_v8 = vadd.f32 1.0, %v2892_v47  ;;  %v1133_v30 = vadd.f32 %v3710_v11, %v3647_v59 }
 0x263   : > { %2907 = vtanh.f32 %v1527_v7  ;;  %v1528_v38 = vadd.f32 %v1496_v27, %v3549_v32  ;;  %v2640_v32 = vmul.f32 -1.442695, %v1103_v20 }
 0x264   : > { %2909 = vpow2.f32 %v2638_v45 }
 0x265   : > { %v2896_v55 = vpop.eup %2895  ;;  %2911 = vtanh.f32 %v1528_v38 }
 0x266   : > { %v2898_v46 = vpop.eup %2897  ;;  %2913 = vrcp.f32 %v1276_v49  ;;  %v1412_v35 = vpop.permute.xlu0 %1411  ;;  %1659 = vrot.lane.b32.xlu0 %v2896_v55, %s3033_s23 }
 0x267   : > { %v2900_v25 = vpop.eup %2899  ;;  %v1497_v21 = vmul.f32 %v3857_v42, %v1412_v35  ;;  %2915 = vpow2.f32 %v2639_v60  ;;  %v1278_v29 = vadd.f32 1.0, %v2898_v46  ;;  %v1123_v46 = vadd.f32 %v3684_v9, %v3647_v59 }
 0x268   : > { %v3863_v37 = vpop.eup %2901  ;;  %v1414_v40 = vpop.permute.xlu1 %1413  ;;  %1661 = vrot.lane.b32.xlu1 %v2900_v25, %s3033_s23  ;;  %2917 = vrcp.f32 %v1277_v8  ;;  %v2643_v35 = vmul.f32 -1.442695, %v1119_v41 }
 0x269   : > { %v1529_v53 = vadd.f32 %v1497_v21, %v3558_v43  ;;  %v1498_v2 = vmul.f32 %v3863_v37, %v1414_v40  ;;  %v2904_v4 = vpop.eup %2903 }
 0x26a   : > { %v3871_v61 = vpop.eup %2905  ;;  %v1279_v43 = vadd.f32 1.0, %v2904_v4 }
 0x26b   : > { %2919 = vtanh.f32 %v1529_v53  ;;  %v1530_v12 = vadd.f32 %v1498_v2, %v3563_v48  ;;  %v2642_v48 = vmul.f32 -1.442695, %v1113_v44 }
 0x26c   : > { %2921 = vpow2.f32 %v2640_v32 }
 0x26d   : > { %v2908_v3 = vpop.eup %2907  ;;  %2923 = vtanh.f32 %v1530_v12 }
 0x26e   : > { %v2910_v17 = vpop.eup %2909  ;;  %2925 = vrcp.f32 %v1278_v29  ;;  %v1416_v45 = vpop.permute.xlu0 %1415  ;;  %1663 = vrot.lane.b32.xlu0 %v2908_v3, %s3033_s23  ;;  %v2645_v3 = vmul.f32 -1.442695, %v1129_v5 }
 0x26f   : > { %v2912_v39 = vpop.eup %2911  ;;  %v1499_v16 = vmul.f32 %v3871_v61, %v1416_v45  ;;  %2927 = vpow2.f32 %v2641_v22  ;;  %v1280_v38 = vadd.f32 1.0, %v2910_v17 }
 0x270   : > { %v3877_v7 = vpop.eup %2913  ;;  %v1418_v27 = vpop.permute.xlu1 %1417  ;;  %1665 = vrot.lane.b32.xlu1 %v2912_v39, %s3033_s23  ;;  %2929 = vrcp.f32 %v1279_v43 }
 0x271   : > { %v1531_v49 = vadd.f32 %v1499_v16, %v3572_v36  ;;  %v1500_v47 = vmul.f32 %v3877_v7, %v1418_v27  ;;  %v2916_v20 = vpop.eup %2915 }
 0x272   : > { %v3885_v60 = vpop.eup %2917  ;;  %v1281_v36 = vadd.f32 1.0, %v2916_v20 }
 0x273   : > { %2931 = vtanh.f32 %v1531_v49  ;;  %v1532_v55 = vadd.f32 %v1500_v47, %v3577_v58  ;;  %v2644_v58 = vmul.f32 -1.442695, %v1123_v46 }
 0x274   : > { %2933 = vpow2.f32 %v2642_v48  ;;  %v1139_v48 = vadd.f32 %v3727_v31, %v3647_v59  ;;  %v1143_v31 = vadd.f32 %v3734_v50, %v3647_v59 }
 0x275   : > { %v2920_v8 = vpop.eup %2919  ;;  %2935 = vtanh.f32 %v1532_v55 }
 0x276   : > { %v2922_v23 = vpop.eup %2921  ;;  %2937 = vrcp.f32 %v1280_v38  ;;  %v1420_v25 = vpop.permute.xlu0 %1419  ;;  %1667 = vrot.lane.b32.xlu0 %v2920_v8, %s3033_s23  ;;  %v2647_v55 = vmul.f32 -1.442695, %v1139_v48 }
 0x277   : > { %v2924_v21 = vpop.eup %2923  ;;  %v1501_v32 = vmul.f32 %v3885_v60, %v1420_v25  ;;  %2939 = vpow2.f32 %v2643_v35  ;;  %v1282_v29 = vadd.f32 1.0, %v2922_v23 }
 0x278   : > { %v3891_v40 = vpop.eup %2925  ;;  %v1422_v53 = vpop.permute.xlu1 %1421  ;;  %1669 = vrot.lane.b32.xlu1 %v2924_v21, %s3033_s23  ;;  %2941 = vrcp.f32 %v1281_v36 }
 0x279   : > { %v1533_v9 = vadd.f32 %v1501_v32, %v3586_v0  ;;  %v1502_v2 = vmul.f32 %v3891_v40, %v1422_v53  ;;  %v2928_v4 = vpop.eup %2927  ;;  %v1149_v53 = vadd.f32 %v3749_v1, %v3647_v59 }
 0x27a   : > { %v3899_v44 = vpop.eup %2929  ;;  %v1283_v0 = vadd.f32 1.0, %v2928_v4 }
 0x27b   : > { %2943 = vtanh.f32 %v1533_v9  ;;  %v1534_v12 = vadd.f32 %v1502_v2, %v3593_v10  ;;  %v2646_v10 = vmul.f32 -1.442695, %v1133_v30 }
 0x27c   : > { %2945 = vpow2.f32 %v2644_v58 }
 0x27d   : > { %v2932_v22 = vpop.eup %2931  ;;  %2947 = vtanh.f32 %v1534_v12 }
 0x27e   : > { %v2934_v17 = vpop.eup %2933  ;;  %2949 = vrcp.f32 %v1282_v29  ;;  %v1424_v43 = vpop.permute.xlu0 %1423  ;;  %1671 = vrot.lane.b32.xlu0 %v2932_v22, %s3033_s23  ;;  %v1153_v29 = vadd.f32 %v3758_v62, %v3647_v59 }
 0x27f   : > { %v2936_v45 = vpop.eup %2935  ;;  %v1503_v39 = vmul.f32 %v3899_v44, %v1424_v43  ;;  %2951 = vpow2.f32 %v2645_v3  ;;  %v1284_v49 = vadd.f32 1.0, %v2934_v17  ;;  %v2649_v3 = vmul.f32 -1.442695, %v1149_v53 }
 0x280   : > { %v3905_v16 = vpop.eup %2937  ;;  %v1426_v27 = vpop.permute.xlu1 %1425  ;;  %1673 = vrot.lane.b32.xlu1 %v2936_v45, %s3033_s23  ;;  %2953 = vrcp.f32 %v1283_v0 }
 0x281   : > { %v1535_v11 = vadd.f32 %v1503_v39, %v3608_v15  ;;  %v1504_v41 = vmul.f32 %v3905_v16, %v1426_v27  ;;  %v2940_v47 = vpop.eup %2939  ;;  %v4502_v27 = vld [vmem:[#allocation15_spill] sm:$0xff] }
 0x282   : > { %v3913_v20 = vpop.eup %2941  ;;  %v1285_v15 = vadd.f32 1.0, %v2940_v47 }
 0x283   : > { %2955 = vtanh.f32 %v1535_v11  ;;  %v1536_v38 = vadd.f32 %v1504_v41, %v3615_v26  ;;  %v2648_v26 = vmul.f32 -1.442695, %v1143_v31 }
 0x284   : > { %2957 = vpow2.f32 %v2646_v10  ;;  %v4501_v10 = vld [vmem:[#allocation38_spill] sm:$0xff] }
 0x285   : > { %v2944_v46 = vpop.eup %2943  ;;  %2959 = vtanh.f32 %v1536_v38  ;;  %v1159_v48 = vadd.f32 %v4501_v10, %v3647_v59 }
 0x286   : > { %v2946_v8 = vpop.eup %2945  ;;  %2961 = vrcp.f32 %v1284_v49  ;;  %v1428_v35 = vpop.permute.xlu0 %1427  ;;  %1675 = vrot.lane.b32.xlu0 %v2944_v46, %s3033_s23  ;;  %v1163_v49 = vadd.f32 %v3785_v13, %v3647_v59  ;;  %v4503_v59 = vld [vmem:[#allocation19_spill] sm:$0xff] }
 0x287   : > { %v2948_v23 = vpop.eup %2947  ;;  %v1505_v36 = vmul.f32 %v3913_v20, %v1428_v35  ;;  %2963 = vpow2.f32 %v2647_v55  ;;  %v1286_v5 = vadd.f32 1.0, %v2946_v8  ;;  %v2651_v55 = vmul.f32 -1.442695, %v1159_v48 }
 0x288   : > { %v3919_v25 = vpop.eup %2949  ;;  %v1430_v21 = vpop.permute.xlu1 %1429  ;;  %1677 = vrot.lane.b32.xlu1 %v2948_v23, %s3033_s23  ;;  %2965 = vrcp.f32 %v1285_v15  ;;  %v2652_v35 = vmul.f32 -1.442695, %v1163_v49 }
 0x289   : > { %v1537_v50 = vadd.f32 %v1505_v36, %v3630_v63  ;;  %v1506_v32 = vmul.f32 %v3919_v25, %v1430_v21  ;;  %v2952_v58 = vpop.eup %2951 }
 0x28a   : > { %v3927_v2 = vpop.eup %2953  ;;  %v1287_v12 = vadd.f32 1.0, %v2952_v58 }
 0x28b   : > { %2967 = vtanh.f32 %v1537_v50  ;;  %v1538_v9 = vadd.f32 %v1506_v32, %v3638_v52  ;;  %v2650_v52 = vmul.f32 -1.442695, %v1153_v29  ;;  %v4504_v50 = vld [vmem:[#allocation20_spill] sm:$0xff] }
 0x28c   : > { %2969 = vpow2.f32 %v2648_v26 }
 0x28d   : > { %v2956_v4 = vpop.eup %2955  ;;  %2971 = vtanh.f32 %v1538_v9 }
 0x28e   : > { %v2958_v63 = vpop.eup %2957  ;;  %2973 = vrcp.f32 %v1286_v5  ;;  %v1432_v30 = vpop.permute.xlu0 %1431  ;;  %1679 = vrot.lane.b32.xlu0 %v2956_v4, %s3033_s23 }
 0x28f   : > { %v2960_v22 = vpop.eup %2959  ;;  %v1507_v1 = vmul.f32 %v3927_v2, %v1432_v30  ;;  %2975 = vrcp.f32 %v1287_v12  ;;  %v1288_v39 = vadd.f32 1.0, %v2958_v63  ;;  %v4505_v30 = vld [vmem:[#allocation24_spill] sm:$0xff] }
 0x290   : > { %v3933_v17 = vpop.eup %2961  ;;  %v1434_v0 = vpop.permute.xlu1 %1433  ;;  %1681 = vrot.lane.b32.xlu1 %v2960_v22, %s3033_s23  ;;  %2977 = vpow2.f32 %v2649_v3 }
 0x291   : > { %v1539_v62 = vadd.f32 %v1507_v1, %v3656_v54  ;;  %v1508_v43 = vmul.f32 %v3933_v17, %v1434_v0  ;;  %v2964_v45 = vpop.eup %2963 }
 0x292   : > { %v3941_v41 = vpop.eup %2965  ;;  %v1289_v38 = vadd.f32 1.0, %v2964_v45 }
 0x293   : > { %2979 = vtanh.f32 %v1539_v62  ;;  %v1540_v11 = vadd.f32 %v1508_v43, %v4502_v27  ;;  %v4506_v62 = vld [vmem:[#allocation26_spill] sm:$0xff] }
 0x294   : > { %2981 = vpow2.f32 %v2650_v52 }
 0x295   : > { %v2968_v47 = vpop.eup %2967  ;;  %2983 = vtanh.f32 %v1540_v11 }
 0x296   : > { %v2970_v54 = vpop.eup %2969  ;;  %2985 = vrcp.f32 %v1288_v39  ;;  %v1436_v31 = vpop.permute.xlu0 %1435  ;;  %1683 = vrot.lane.b32.xlu0 %v2968_v47, %s3033_s23 }
 0x297   : > { %v2972_v46 = vpop.eup %2971  ;;  %v1509_v8 = vmul.f32 %v3941_v41, %v1436_v31  ;;  %2987 = vrcp.f32 %v1289_v38  ;;  %v1290_v26 = vadd.f32 1.0, %v2970_v54  ;;  %v4507_v54 = vld [vmem:[#allocation29_spill] sm:$0xff] }
 0x298   : > { %v3947_v15 = vpop.eup %2973  ;;  %v1438_v23 = vpop.permute.xlu1 %1437  ;;  %1685 = vrot.lane.b32.xlu1 %v2972_v46, %s3033_s23  ;;  %2989 = vpow2.f32 %v2651_v55 }
 0x299   : > { %v1541_v13 = vadd.f32 %v1509_v8, %v4503_v59  ;;  %v1510_v36 = vmul.f32 %v3947_v15, %v1438_v23  ;;  %v3952_v21 = vpop.eup %2975  ;;  %v4508_v8 = vld [vmem:[#allocation31_spill] sm:$0xff] }
 0x29a   : > { %v2978_v58 = vpop.eup %2977 }
 0x29b   : > { %2991 = vtanh.f32 %v1541_v13  ;;  %v1542_v32 = vadd.f32 %v1510_v36, %v4504_v50  ;;  %v1291_v63 = vadd.f32 1.0, %v2978_v58  ;;  %v4509_v58 = vld [vmem:[#allocation34_spill] sm:$0xff] }
 0x29c   : > { %2993 = vpow2.f32 %v2652_v35 }
 0x29d   : > { %v2980_v5 = vpop.eup %2979  ;;  %2995 = vtanh.f32 %v1542_v32 }
 0x29e   : > { %v2982_v53 = vpop.eup %2981  ;;  %2997 = vrcp.f32 %v1290_v26  ;;  %v1440_v9 = vpop.permute.xlu0 %1439  ;;  %1687 = vrot.lane.b32.xlu0 %v2980_v5, %s3033_s23 }
 0x29f   : > { %v2984_v29 = vpop.eup %2983  ;;  %v1511_v4 = vmul.f32 %v3952_v21, %v1440_v9  ;;  %v1292_v52 = vadd.f32 1.0, %v2982_v53  ;;  %v4510_v9 = vld [vmem:[#allocation36_spill] sm:$0xff] }
 0x2a0   : > { %v3957_v12 = vpop.eup %2985  ;;  %v1442_v3 = vpop.permute.xlu1 %1441  ;;  %1689 = vrot.lane.b32.xlu1 %v2984_v29, %s3033_s23 }
 0x2a1   : > { %v1543_v22 = vadd.f32 %v1511_v4, %v4505_v30  ;;  %v1512_v1 = vmul.f32 %v3957_v12, %v1442_v3  ;;  %v3962_v0 = vpop.eup %2987  ;;  %v2827_v4 = vld [vmem:[%s4449_s6] sm:$0xff]  }
 0x2a2   : > { %v2990_v45 = vpop.eup %2989  ;;  %2750 = vmatprep.subr.bf16.mxu0 %v2827_v4 }
 0x2a3   : > { %2999 = vtanh.f32 %v1543_v22  ;;  %v1544_v43 = vadd.f32 %v1512_v1, %v4506_v62  ;;  %v1293_v47 = vadd.f32 1.0, %v2990_v45  ;;  %2751 = vmatpush3.bf16.msra.mxu0 %v2827_v4 }
 0x2a4   : > { %3001 = vrcp.f32 %v1291_v63 }
 0x2a5   : > { %v2992_v39 = vpop.eup %2991  ;;  %3003 = vtanh.f32 %v1544_v43 }
 0x2a6   : > { %v2994_v10 = vpop.eup %2993  ;;  %3005 = vrcp.f32 %v1292_v52  ;;  %v1444_v48 = vpop.permute.xlu0 %1443  ;;  %1691 = vrot.lane.b32.xlu0 %v2992_v39, %s3033_s23  ;;  %v2828_v52 = vld [vmem:[%s4449_s6 + $0x8] sm:$0xff]  }
 0x2a7   : > { %v2996_v27 = vpop.eup %2995  ;;  %v1513_v11 = vmul.f32 %v3962_v0, %v1444_v48  ;;  %v1294_v46 = vadd.f32 1.0, %v2994_v10  ;;  %2752 = vmatprep.subr.bf16.mxu0 %v2828_v52 }
 0x2a8   : > { %v3967_v49 = vpop.eup %2997  ;;  %v1446_v38 = vpop.permute.xlu1 %1445  ;;  %1693 = vrot.lane.b32.xlu1 %v2996_v27, %s3033_s23  ;;  %2753 = vmatpush3.bf16.msra.mxu0 %v2828_v52  ;;  %v2829_v27 = vld [vmem:[%s4449_s6 + $0x10] sm:$0xff]  }
 0x2a9   : > { %v1545_v55 = vadd.f32 %v1513_v11, %v4507_v54  ;;  %v1514_v31 = vmul.f32 %v3967_v49, %v1446_v38  ;;  %2754 = vmatprep.subr.bf16.mxu0 %v2829_v27  ;;  %v2830_v54 = vld [vmem:[%s4449_s6 + $0x18] sm:$0xff]   ;;  %v4514_v52 = vld [vmem:[#allocation4_spill] sm:$0xff] }
 0x2ab   : > { %3007 = vtanh.f32 %v1545_v55  ;;  %v1546_v35 = vadd.f32 %v1514_v31, %v4508_v8  ;;  %v1584_v31 = vsub.f32 1.0, %v3774_v28 }
 0x2ac   : > { %3009 = vrcp.f32 %v1293_v47  ;;  %2755 = vmatpush3.bf16.msra.mxu0 %v2829_v27 }
 0x2ad   : > { %v3000_v23 = vpop.eup %2999  ;;  %3011 = vtanh.f32 %v1546_v35  ;;  %2756 = vmatprep.subr.bf16.mxu0 %v2830_v54 }
 0x2ae   : > { %v3973_v59 = vpop.eup %3001  ;;  %3013 = vrcp.f32 %v1294_v46  ;;  %v1448_v13 = vpop.permute.xlu0 %1447  ;;  %1695 = vrot.lane.b32.xlu0 %v3000_v23, %s3033_s23  ;;  %v4511_v46 = vld [vmem:[#allocation37_spill] sm:$0xff] }
 0x2af   : > { %v3004_v36 = vpop.eup %3003  ;;  %v1515_v26 = vmul.f32 %v3973_v59, %v1448_v13  ;;  %v1583_v8 = vsub.f32 1.0, %v4511_v46 }
 0x2b0   : > { %v3977_v50 = vpop.eup %3005  ;;  %v1450_v32 = vpop.permute.xlu1 %1449  ;;  %1697 = vrot.lane.b32.xlu1 %v3004_v36, %s3033_s23  ;;  %2757 = vmatpush3.bf16.msra.mxu0 %v2830_v54  ;;  %v4512_v36 = vld [vmem:[#allocation3_spill] sm:$0xff] }
 0x2b1   : > { %v1547_v5 = vadd.f32 %v1515_v26, %v4509_v58  ;;  %v1516_v53 = vmul.f32 %v3977_v50, %v1450_v32  ;;  %v1904_v26 = vmul.f32 %v3774_v28, %v4512_v36 }
 0x2b3   : > { %3015 = vtanh.f32 %v1547_v5  ;;  %v1548_v29 = vadd.f32 %v1516_v53, %v4510_v9  ;;  %v1585_v5 = vsub.f32 1.0, %v3795_v57  ;;  %v4513_v53 = vld [vmem:[#allocation2_spill] sm:$0xff] }
 0x2b4   : > { %v1903_v9 = vmul.f32 %v4511_v46, %v4513_v53  ;;  %v1588_v46 = vsub.f32 1.0, %v3820_v19  ;;  %v1589_v53 = vsub.f32 1.0, %v3829_v18 }
 0x2b5   : > { %v3008_v63 = vpop.eup %3007  ;;  %3017 = vtanh.f32 %v1548_v29 }
 0x2b6   : > { %v3986_v3 = vpop.eup %3009  ;;  %v1452_v30 = vpop.permute.xlu0 %1451  ;;  %1699 = vrot.lane.b32.xlu0 %v3008_v63, %s3033_s23 }
 0x2b7   : > { %v3012_v22 = vpop.eup %3011  ;;  %v1517_v1 = vmul.f32 %v3986_v3, %v1452_v30  ;;  %v1586_v30 = vsub.f32 1.0, %v3800_v6 }
 0x2b8   : > { %v3993_v62 = vpop.eup %3013  ;;  %v1454_v43 = vpop.permute.xlu1 %1453  ;;  %1701 = vrot.lane.b32.xlu1 %v3012_v22, %s3033_s23 }
 0x2b9   : > { %v1549_v45 = vadd.f32 %v1517_v1, %v3783_v56  ;;  %v1518_v39 = vmul.f32 %v3993_v62, %v1454_v43  ;;  %v3023_v1 = vld [vmem:[%s3146_s18 + $0xf0] sm:$0xff]  ;;  %v1905_v43 = vmul.f32 %v3795_v57, %v4514_v52  ;;  %v1587_v57 = vsub.f32 1.0, %v3815_v51 }
 0x2ba   : > { %v3998_v10 = vpop.permute.xlu0 %1859 }
 0x2bb   : > { %3019 = vtanh.f32 %v1549_v45  ;;  %v1550_v48 = vadd.f32 %v1518_v39, %v3791_v24  ;;  %v4515_v45 = vld [vmem:[#allocation5_spill] sm:$0xff] }
 0x2bc   : > { %v4004_v11 = vpop.permute.xlu1 %1861  ;;  %v1906_v39 = vmul.f32 %v3800_v6, %v4515_v45 }
 0x2bd   : > { %v3016_v47 = vpop.eup %3015  ;;  %3021 = vtanh.f32 %v1550_v48 }
 0x2be   : > { %v4006_v38 = vpop.permute.xlu0 %1863  ;;  %1703 = vrot.lane.b32.xlu0 %v3016_v47, %s3033_s23  ;;  %v3024_v47 = vld [vmem:[%s3146_s18 + $0xf8] sm:$0xff] }
 0x2bf   : > { %v3018_v56 = vpop.eup %3017 }
 0x2c0   : > { %v4012_v24 = vpop.permute.xlu1 %1865  ;;  %1705 = vrot.lane.b32.xlu1 %v3018_v56, %s3033_s23 }
 0x2c2   : > { %v1648_v55 = vpop.permute.xlu0 %1647 }
 0x2c3   : > { %v1743_v32 = vmul.f32 %v1648_v55, %v1583_v8 }
 0x2c4   : > { %v1650_v35 = vpop.permute.xlu1 %1649 }
 0x2c5   : > { %v3020_v23 = vpop.eup %3019  ;;  %v1744_v13 = vmul.f32 %v1650_v35, %v1584_v31  ;;  %v4027_v22 = vadd.f32 %v1903_v9, %v1743_v32  ;;  %v4516_v35 = vld [vmem:[#allocation6_spill] sm:$0xff] }
 0x2c6   : > { %1707 = vrot.lane.b32.xlu0 %v3020_v23, %s3033_s23  ;;  %v1907_v23 = vmul.f32 %v3815_v51, %v4516_v35 }
 0x2c7   : > { %v3022_v58 = vpop.eup %3021  ;;  %v4023_v29 = vadd.f32 %v1904_v26, %v1744_v13  ;;  %v4517_v13 = vld [vmem:[#allocation7_spill] sm:$0xff] }
 0x2c8   : > { %1709 = vrot.lane.b32.xlu1 %v3022_v58, %s3033_s23  ;;  %v1652_v4 = vpop.permute.xlu0 %1651  ;;  %v1908_v36 = vmul.f32 %v3820_v19, %v4517_v13  ;;  %v1593_v13 = vsub.f32 1.0, %v3857_v42 }
 0x2c9   : > { %v1745_v63 = vmul.f32 %v1652_v4, %v1585_v5  ;;  %v1967_v27 = vpack.c.bf16 %v4023_v29, %v4027_v22 }
 0x2ca   : > { %v1654_v28 = vpop.permute.xlu1 %1653  ;;  %1867 = vrot.lane.b32.xlu0 %v3023_v1, %s3033_s23 }
 0x2cb   : > { %v1746_v48 = vmul.f32 %v1654_v28, %v1586_v30  ;;  %v4039_v56 = vadd.f32 %v1905_v43, %v1745_v63  ;;  %v1590_v63 = vsub.f32 1.0, %v3835_v34  ;;  %v4518_v30 = vld [vmem:[#allocation8_spill] sm:$0xff]  ;;  %v4519_v28 = vld [vmem:[#allocation9_spill] sm:$0xff] }
 0x2cc   : > { %1869 = vrot.lane.b32.xlu1 %v3024_v47, %s3033_s23  ;;  %v1909_v19 = vmul.f32 %v3829_v18, %v4518_v30  ;;  %v1910_v1 = vmul.f32 %v3835_v34, %v4519_v28  ;;  %v1595_v28 = vsub.f32 1.0, %v3871_v61 }
 0x2cd   : > { %v4041_v54 = vadd.f32 %v1906_v39, %v1746_v48  ;;  %v1591_v48 = vsub.f32 1.0, %v3843_v14 }
 0x2ce   : > { %2014 = vrot.lane.b32.xlu0 %v1967_v27, %s3033_s23 }
 0x2cf   : > { %v1968_v55 = vpack.c.bf16 %v4041_v54, %v4039_v56 }
 0x2d0   : > { %v1656_v31 = vpop.permute.xlu0 %1655 }
 0x2d1   : > { %v1747_v6 = vmul.f32 %v1656_v31, %v1587_v57  ;;  %2016 = vrot.lane.b32.xlu1 %v1968_v55, %s3033_s23  ;;  %v1592_v55 = vsub.f32 1.0, %v3849_v33  ;;  %v4520_v57 = vld [vmem:[#allocation10_spill] sm:$0xff]  ;;  %v4521_v31 = vld [vmem:[#allocation11_spill] sm:$0xff] }
 0x2d2   : > { %v1658_v8 = vpop.permute.xlu1 %1657  ;;  %v1911_v34 = vmul.f32 %v3843_v14, %v4520_v57 }
 0x2d3   : > { %v1748_v26 = vmul.f32 %v1658_v8, %v1588_v46  ;;  %v4053_v32 = vadd.f32 %v1907_v23, %v1747_v6  ;;  %v1912_v6 = vmul.f32 %v3849_v33, %v4521_v31  ;;  %v1597_v31 = vsub.f32 1.0, %v3885_v60 }
 0x2d5   : > { %v4055_v58 = vadd.f32 %v1908_v36, %v1748_v26 }
 0x2d7   : > { %v1969_v5 = vpack.c.bf16 %v4055_v58, %v4053_v32 }
 0x2d8   : > { %v1660_v9 = vpop.permute.xlu0 %1659 }
 0x2d9   : > { %v1749_v4 = vmul.f32 %v1660_v9, %v1589_v53  ;;  %2018 = vrot.lane.b32.xlu0 %v1969_v5, %s3033_s23  ;;  %v1594_v5 = vsub.f32 1.0, %v3863_v37  ;;  %v4522_v53 = vld [vmem:[#allocation12_spill] sm:$0xff]  ;;  %v4523_v9 = vld [vmem:[#allocation13_spill] sm:$0xff] }
 0x2da   : > { %v1662_v51 = vpop.permute.xlu1 %1661  ;;  %v1913_v33 = vmul.f32 %v3857_v42, %v4522_v53 }
 0x2db   : > { %v1750_v52 = vmul.f32 %v1662_v51, %v1590_v63  ;;  %v4066_v43 = vadd.f32 %v1909_v19, %v1749_v4  ;;  %v1914_v4 = vmul.f32 %v3863_v37, %v4523_v9  ;;  %v1599_v9 = vsub.f32 1.0, %v3899_v44 }
 0x2dd   : > { %v4068_v45 = vadd.f32 %v1910_v1, %v1750_v52 }
 0x2df   : > { %v1970_v39 = vpack.c.bf16 %v4068_v45, %v4066_v43 }
 0x2e0   : > { %v1664_v27 = vpop.permute.xlu0 %1663 }
 0x2e1   : > { %v1751_v47 = vmul.f32 %v1664_v27, %v1591_v48  ;;  %2020 = vrot.lane.b32.xlu1 %v1970_v39, %s3033_s23  ;;  %v1596_v39 = vsub.f32 1.0, %v3877_v7  ;;  %v4524_v48 = vld [vmem:[#allocation14_spill] sm:$0xff]  ;;  %v4525_v27 = vld [vmem:[#allocation16_spill] sm:$0xff] }
 0x2e2   : > { %v1666_v18 = vpop.permute.xlu1 %1665  ;;  %v1915_v37 = vmul.f32 %v3871_v61, %v4524_v48 }
 0x2e3   : > { %v1752_v46 = vmul.f32 %v1666_v18, %v1592_v55  ;;  %v4079_v8 = vadd.f32 %v1911_v34, %v1751_v47  ;;  %v1916_v47 = vmul.f32 %v3877_v7, %v4525_v27  ;;  %v1601_v27 = vsub.f32 1.0, %v3913_v20 }
 0x2e5   : > { %v4081_v35 = vadd.f32 %v1912_v6, %v1752_v46 }
 0x2e7   : > { %v1971_v23 = vpack.c.bf16 %v4081_v35, %v4079_v8 }
 0x2e8   : > { %v1668_v36 = vpop.permute.xlu0 %1667 }
 0x2e9   : > { %v1753_v26 = vmul.f32 %v1668_v36, %v1593_v13  ;;  %2022 = vrot.lane.b32.xlu0 %v1971_v23, %s3033_s23  ;;  %v1598_v23 = vsub.f32 1.0, %v3891_v40  ;;  %v4526_v13 = vld [vmem:[#allocation17_spill] sm:$0xff]  ;;  %v4527_v36 = vld [vmem:[#allocation18_spill] sm:$0xff] }
 0x2ea   : > { %v1670_v14 = vpop.permute.xlu1 %1669  ;;  %v1917_v7 = vmul.f32 %v3885_v60, %v4526_v13 }
 0x2eb   : > { %v1754_v63 = vmul.f32 %v1670_v14, %v1594_v5  ;;  %v4092_v51 = vadd.f32 %v1913_v33, %v1753_v26  ;;  %v1918_v26 = vmul.f32 %v3891_v40, %v4527_v36  ;;  %v1603_v36 = vsub.f32 1.0, %v3927_v2 }
 0x2ed   : > { %v4094_v30 = vadd.f32 %v1914_v4, %v1754_v63 }
 0x2ef   : > { %v1972_v19 = vpack.c.bf16 %v4094_v30, %v4092_v51 }
 0x2f0   : > { %v1672_v1 = vpop.permute.xlu0 %1671 }
 0x2f1   : > { %v1755_v52 = vmul.f32 %v1672_v1, %v1595_v28  ;;  %2024 = vrot.lane.b32.xlu1 %v1972_v19, %s3033_s23  ;;  %v1600_v19 = vsub.f32 1.0, %v3905_v16  ;;  %v4528_v28 = vld [vmem:[#allocation21_spill] sm:$0xff]  ;;  %v4529_v1 = vld [vmem:[#allocation22_spill] sm:$0xff] }
 0x2f2   : > { %v1674_v42 = vpop.permute.xlu1 %1673  ;;  %v1919_v40 = vmul.f32 %v3899_v44, %v4528_v28 }
 0x2f3   : > { %v1756_v55 = vmul.f32 %v1674_v42, %v1596_v39  ;;  %v4105_v18 = vadd.f32 %v1915_v37, %v1755_v52  ;;  %v1920_v52 = vmul.f32 %v3905_v16, %v4529_v1  ;;  %v1605_v1 = vsub.f32 1.0, %v3941_v41 }
 0x2f5   : > { %v4107_v57 = vadd.f32 %v1916_v47, %v1756_v55 }
 0x2f7   : > { %v1973_v34 = vpack.c.bf16 %v4107_v57, %v4105_v18 }
 0x2f8   : > { %v1676_v6 = vpop.permute.xlu0 %1675 }
 0x2f9   : > { %v1757_v46 = vmul.f32 %v1676_v6, %v1597_v31  ;;  %2026 = vrot.lane.b32.xlu0 %v1973_v34, %s3033_s23  ;;  %v1602_v34 = vsub.f32 1.0, %v3919_v25  ;;  %v4530_v31 = vld [vmem:[#allocation23_spill] sm:$0xff]  ;;  %v4531_v6 = vld [vmem:[#allocation25_spill] sm:$0xff] }
 0x2fa   : > { %v1678_v61 = vpop.permute.xlu1 %1677  ;;  %v1921_v16 = vmul.f32 %v3913_v20, %v4530_v31 }
 0x2fb   : > { %v1758_v5 = vmul.f32 %v1678_v61, %v1598_v23  ;;  %v4118_v14 = vadd.f32 %v1917_v7, %v1757_v46  ;;  %v1922_v46 = vmul.f32 %v3919_v25, %v4531_v6  ;;  %v1607_v6 = vsub.f32 1.0, %v3952_v21 }
 0x2fd   : > { %v4120_v53 = vadd.f32 %v1918_v26, %v1758_v5 }
 0x2ff   : > { %v1974_v33 = vpack.c.bf16 %v4120_v53, %v4118_v14 }
 0x300   : > { %v1680_v4 = vpop.permute.xlu0 %1679 }
 0x301   : > { %v1759_v63 = vmul.f32 %v1680_v4, %v1599_v9  ;;  %2028 = vrot.lane.b32.xlu1 %v1974_v33, %s3033_s23  ;;  %v1604_v33 = vsub.f32 1.0, %v3933_v17  ;;  %v4532_v9 = vld [vmem:[#allocation27_spill] sm:$0xff]  ;;  %v4533_v4 = vld [vmem:[#allocation28_spill] sm:$0xff] }
 0x302   : > { %v1682_v60 = vpop.permute.xlu1 %1681  ;;  %v1923_v25 = vmul.f32 %v3927_v2, %v4532_v9 }
 0x303   : > { %v1760_v39 = vmul.f32 %v1682_v60, %v1600_v19  ;;  %v4131_v42 = vadd.f32 %v1919_v40, %v1759_v63  ;;  %v1924_v63 = vmul.f32 %v3933_v17, %v4533_v4  ;;  %v1609_v4 = vsub.f32 1.0, %v3962_v0 }
 0x305   : > { %v4133_v48 = vadd.f32 %v1920_v52, %v1760_v39 }
 0x307   : > { %v1975_v37 = vpack.c.bf16 %v4133_v48, %v4131_v42 }
 0x308   : > { %v1684_v47 = vpop.permute.xlu0 %1683 }
 0x309   : > { %v1761_v55 = vmul.f32 %v1684_v47, %v1601_v27  ;;  %2030 = vrot.lane.b32.xlu0 %v1975_v37, %s3033_s23  ;;  %v1606_v37 = vsub.f32 1.0, %v3947_v15  ;;  %v4534_v27 = vld [vmem:[#allocation30_spill] sm:$0xff]  ;;  %v4535_v47 = vld [vmem:[#allocation32_spill] sm:$0xff] }
 0x30a   : > { %v1686_v44 = vpop.permute.xlu1 %1685  ;;  %v1925_v17 = vmul.f32 %v3941_v41, %v4534_v27  ;;  %v1611_v27 = vsub.f32 1.0, %v3973_v59 }
 0x30b   : > { %v1762_v23 = vmul.f32 %v1686_v44, %v1602_v34  ;;  %v4144_v61 = vadd.f32 %v1921_v16, %v1761_v55  ;;  %v1926_v55 = vmul.f32 %v3947_v15, %v4535_v47 }
 0x30d   : > { %v4146_v13 = vadd.f32 %v1922_v46, %v1762_v23 }
 0x30f   : > { %v1976_v7 = vpack.c.bf16 %v4146_v13, %v4144_v61 }
 0x310   : > { %v1688_v26 = vpop.permute.xlu0 %1687 }
 0x311   : > { %v1763_v5 = vmul.f32 %v1688_v26, %v1603_v36  ;;  %2032 = vrot.lane.b32.xlu1 %v1976_v7, %s3033_s23  ;;  %v1608_v7 = vsub.f32 1.0, %v3957_v12  ;;  %v4536_v36 = vld [vmem:[#allocation33_spill] sm:$0xff]  ;;  %v4537_v26 = vld [vmem:[#allocation35_spill] sm:$0xff] }
 0x312   : > { %v1690_v20 = vpop.permute.xlu1 %1689  ;;  %v1927_v15 = vmul.f32 %v3952_v21, %v4536_v36  ;;  %v1614_v36 = vsub.f32 1.0, %v3993_v62 }
 0x313   : > { %v1764_v19 = vmul.f32 %v1690_v20, %v1604_v33  ;;  %v4157_v60 = vadd.f32 %v1923_v25, %v1763_v5  ;;  %v1928_v5 = vmul.f32 %v3957_v12, %v4537_v26  ;;  %v1929_v12 = vmul.f32 %v3962_v0, %v3998_v10 }
 0x314   : > { %v1932_v10 = vmul.f32 %v3977_v50, %v4012_v24 }
 0x315   : > { %v4159_v28 = vadd.f32 %v1924_v63, %v1764_v19 }
 0x317   : > { %v1977_v40 = vpack.c.bf16 %v4159_v28, %v4157_v60 }
 0x318   : > { %v1692_v52 = vpop.permute.xlu0 %1691 }
 0x319   : > { %v1765_v39 = vmul.f32 %v1692_v52, %v1605_v1  ;;  %2034 = vrot.lane.b32.xlu0 %v1977_v40, %s3033_s23  ;;  %v1610_v40 = vsub.f32 1.0, %v3967_v49  ;;  %v1930_v1 = vmul.f32 %v3967_v49, %v4004_v11  ;;  %v1931_v49 = vmul.f32 %v3973_v59, %v4006_v38 }
 0x31a   : > { %v1694_v2 = vpop.permute.xlu1 %1693 }
 0x31b   : > { %v1766_v34 = vmul.f32 %v1694_v2, %v1606_v37  ;;  %v4170_v44 = vadd.f32 %v1925_v17, %v1765_v39 }
 0x31d   : > { %v4172_v31 = vadd.f32 %v1926_v55, %v1766_v34  ;;  %v1612_v55 = vsub.f32 1.0, %v3977_v50 }
 0x31f   : > { %v1978_v16 = vpack.c.bf16 %v4172_v31, %v4170_v44 }
 0x320   : > { %v1696_v46 = vpop.permute.xlu0 %1695 }
 0x321   : > { %v1767_v23 = vmul.f32 %v1696_v46, %v1607_v6  ;;  %2036 = vrot.lane.b32.xlu1 %v1978_v16, %s3033_s23 }
 0x322   : > { %v1698_v41 = vpop.permute.xlu1 %1697 }
 0x323   : > { %v1768_v33 = vmul.f32 %v1698_v41, %v1608_v7  ;;  %v4183_v20 = vadd.f32 %v1927_v15, %v1767_v23  ;;  %v1613_v41 = vsub.f32 1.0, %v3986_v3 }
 0x325   : > { %v4185_v9 = vadd.f32 %v1928_v5, %v1768_v33 }
 0x327   : > { %v1979_v25 = vpack.c.bf16 %v4185_v9, %v4183_v20 }
 0x328   : > { %v1700_v63 = vpop.permute.xlu0 %1699 }
 0x329   : > { %v1769_v19 = vmul.f32 %v1700_v63, %v1609_v4  ;;  %2038 = vrot.lane.b32.xlu0 %v1979_v25, %s3033_s23 }
 0x32a   : > { %v1702_v21 = vpop.permute.xlu1 %1701 }
 0x32b   : > { %v1770_v52 = vmul.f32 %v1702_v21, %v1610_v40  ;;  %v4196_v39 = vadd.f32 %v1929_v12, %v1769_v19 }
 0x32d   : > { %v4198_v37 = vadd.f32 %v1930_v1, %v1770_v52 }
 0x32f   : > { %v1980_v2 = vpack.c.bf16 %v4198_v37, %v4196_v39 }
 0x330   : > { %v1704_v17 = vpop.permute.xlu0 %1703 }
 0x331   : > { %v1771_v47 = vmul.f32 %v1704_v17, %v1611_v27  ;;  %2040 = vrot.lane.b32.xlu1 %v1980_v2, %s3033_s23 }
 0x332   : > { %v1706_v0 = vpop.permute.xlu1 %1705 }
 0x333   : > { %v1772_v11 = vmul.f32 %v1706_v0, %v1612_v55  ;;  %v1963_v34 = vadd.f32 %v1931_v49, %v1771_v47 }
 0x335   : > { %v4209_v16 = vadd.f32 %v1932_v10, %v1772_v11 }
 0x337   : > { %v1981_v6 = vpack.c.bf16 %v4209_v16, %v1963_v34 }
 0x338   : > { %v1708_v46 = vpop.permute.xlu0 %1707 }
 0x339   : > { %2042 = vrot.lane.b32.xlu0 %v1981_v6, %s3033_s23  ;;  %v1773_v38 = vmul.f32 %v1708_v46, %v1613_v41 }
 0x33a   : > { %v1710_v23 = vpop.permute.xlu1 %1709 }
 0x33b   : > { %v1774_v24 = vmul.f32 %v1710_v23, %v1614_v36 }
 0x33c   : > { %v1868_v7 = vpop.permute.xlu0 %1867 }
 0x33d   : > { %v1933_v59 = vmul.f32 %v3986_v3, %v1868_v7  ;;  %2343 = vrot.lane.b32.xlu0 %v4027_v22, %s3033_s23 }
 0x33e   : > { %v1870_v50 = vpop.permute.xlu1 %1869 }
 0x33f   : > { %v1934_v15 = vmul.f32 %v3993_v62, %v1870_v50  ;;  %v1965_v5 = vadd.f32 %v1933_v59, %v1773_v38 }
 0x340   : > { %v2015_v26 = vpop.permute.xlu0 %2014 }
 0x341   : > { %v1966_v33 = vadd.f32 %v1934_v15, %v1774_v24  ;;  %2347 = vrot.lane.b32.xlu0 %v4039_v56, %s3033_s23  ;;  %2758 = vmatprep.mubr.msk.bf16.mxu0 %vm801_vm2, %v2015_v26 }
 0x343   : > { %v1982_v25 = vpack.c.bf16 %v1966_v33, %v1965_v5  ;;  %v2017_v4 = vpop.permute.xlu1 %2016 }
 0x344   : > { %2759 = vmatmul.mubr.msk.bf16.vlgmr.msra.gmra.mrb[32].mxu0 %vm801_vm2, %v2017_v4 }
 0x345   : > { %2351 = vrot.lane.b32.xlu0 %v4053_v32, %s3033_s23  ;;  %2044 = vrot.lane.b32.xlu1 %v1982_v25, %s3033_s23 }
 0x349   : > { %2355 = vrot.lane.b32.xlu0 %v4066_v43, %s3033_s23  ;;  %2345 = vrot.lane.b32.xlu1 %v4023_v29, %s3033_s23 }
 0x34b   : > { %v2019_v3 = vpop.permute.xlu0 %2018 }
 0x34c   : > { %2762 = vmatprep.mubr.msk.bf16.mxu0 %vm801_vm2, %v2019_v3 }
 0x34d   : > { %2359 = vrot.lane.b32.xlu0 %v4079_v8, %s3033_s23  ;;  %2349 = vrot.lane.b32.xlu1 %v4041_v54, %s3033_s23 }
 0x351   : > { %2363 = vrot.lane.b32.xlu0 %v4092_v51, %s3033_s23  ;;  %2353 = vrot.lane.b32.xlu1 %v4055_v58, %s3033_s23 }
 0x353   : > { %v2021_v62 = vpop.permute.xlu1 %2020 }
 0x354   : > { %2763 = vmatmul.mubr.msk.bf16.gmra.mrb[36].mxu0 %vm801_vm2, %v2021_v62 }
 0x355   : > { %2367 = vrot.lane.b32.xlu0 %v4105_v18, %s3033_s23  ;;  %2357 = vrot.lane.b32.xlu1 %v4068_v45, %s3033_s23 }
 0x359   : > { %2371 = vrot.lane.b32.xlu0 %v4118_v14, %s3033_s23  ;;  %2361 = vrot.lane.b32.xlu1 %v4081_v35, %s3033_s23 }
 0x35b   : > { %v2023_v29 = vpop.permute.xlu0 %2022 }
 0x35c   : > { %2766 = vmatprep.mubr.msk.bf16.mxu0 %vm801_vm2, %v2023_v29 }
 0x35d   : > { %2375 = vrot.lane.b32.xlu0 %v4131_v42, %s3033_s23  ;;  %2365 = vrot.lane.b32.xlu1 %v4094_v30, %s3033_s23 }
 0x361   : > { %2379 = vrot.lane.b32.xlu0 %v4144_v61, %s3033_s23  ;;  %2369 = vrot.lane.b32.xlu1 %v4107_v57, %s3033_s23 }
 0x363   : > { %v2025_v22 = vpop.permute.xlu1 %2024 }
 0x364   : > { %2767 = vmatmul.mubr.msk.bf16.gmra.mrb[40].mxu0 %vm801_vm2, %v2025_v22 }
 0x365   : > { %2383 = vrot.lane.b32.xlu0 %v4157_v60, %s3033_s23  ;;  %2373 = vrot.lane.b32.xlu1 %v4120_v53, %s3033_s23 }
 0x369   : > { %2387 = vrot.lane.b32.xlu0 %v4170_v44, %s3033_s23  ;;  %2377 = vrot.lane.b32.xlu1 %v4133_v48, %s3033_s23 }
 0x36b   : > { %v2027_v56 = vpop.permute.xlu0 %2026 }
 0x36c   : > { %2770 = vmatprep.mubr.msk.bf16.mxu0 %vm801_vm2, %v2027_v56 }
 0x36d   : > { %2391 = vrot.lane.b32.xlu0 %v4183_v20, %s3033_s23  ;;  %2381 = vrot.lane.b32.xlu1 %v4146_v13, %s3033_s23 }
 0x371   : > { %2395 = vrot.lane.b32.xlu0 %v4196_v39, %s3033_s23  ;;  %2385 = vrot.lane.b32.xlu1 %v4159_v28, %s3033_s23 }
 0x373   : > { %v2029_v54 = vpop.permute.xlu1 %2028 }
 0x374   : > { %2771 = vmatmul.mubr.msk.bf16.gmra.mrb[44].mxu0 %vm801_vm2, %v2029_v54 }
 0x375   : > { %2399 = vrot.lane.b32.xlu0 %v1963_v34, %s3033_s23  ;;  %2389 = vrot.lane.b32.xlu1 %v4172_v31, %s3033_s23  ;;  %v4368_v34 = vld [vmem:[%s4450_s7] ss:$0 sm:$0xff] }
 0x379   : > { %2403 = vrot.lane.b32.xlu0 %v1965_v5, %s3033_s23  ;;  %2393 = vrot.lane.b32.xlu1 %v4185_v9, %s3033_s23 }
 0x37b   : > { %v2031_v32 = vpop.permute.xlu0 %2030 }
 0x37c   : > { %2774 = vmatprep.mubr.msk.bf16.mxu0 %vm801_vm2, %v2031_v32 }
 0x37d   : > { %2397 = vrot.lane.b32.xlu1 %v4198_v37, %s3033_s23 }
 0x381   : > { %2401 = vrot.lane.b32.xlu1 %v4209_v16, %s3033_s23 }
 0x383   : > { %v2033_v58 = vpop.permute.xlu1 %2032 }
 0x384   : > { %2775 = vmatmul.mubr.msk.bf16.gmra.mrb[48].mxu0 %vm801_vm2, %v2033_v58 }
 0x385   : > { %2405 = vrot.lane.b32.xlu1 %v1966_v33, %s3033_s23 }
 0x38b   : > { %v2035_v43 = vpop.permute.xlu0 %2034 }
 0x38c   : > { %2778 = vmatprep.mubr.msk.bf16.mxu0 %vm801_vm2, %v2035_v43 }
 0x393   : > { %v2037_v45 = vpop.permute.xlu1 %2036 }
 0x394   : > { %2779 = vmatmul.mubr.msk.bf16.gmra.mrb[52].mxu0 %vm801_vm2, %v2037_v45 }
 0x39b   : > { %v2039_v8 = vpop.permute.xlu0 %2038 }
 0x39c   : > { %2782 = vmatprep.mubr.msk.bf16.mxu0 %vm801_vm2, %v2039_v8 }
 0x3a3   : > { %v2041_v35 = vpop.permute.xlu1 %2040 }
 0x3a4   : > { %2783 = vmatmul.mubr.msk.bf16.gmra.mrb[56].mxu0 %vm801_vm2, %v2041_v35 }
 0x3ab   : > { %v2043_v51 = vpop.permute.xlu0 %2042 }
 0x3ac   : > { %2786 = vmatprep.mubr.msk.bf16.mxu0 %vm801_vm2, %v2043_v51 }
 0x3af   : > { %v2344_v30 = vpop.permute.xlu0 %2343 }
 0x3b0   : > { %2439 = vst.msk [vmem:[%s4298_s29] sm:$0xff] %vm801_vm2, %v2344_v30 }
 0x3b3   : > { %v2348_v18 = vpop.permute.xlu0 %2347 }
 0x3b4   : > { %2441 = vst.msk [vmem:[%s4298_s29 + $0x10] sm:$0xff] %vm801_vm2, %v2348_v18 }
 0x3b7   : > { %v2045_v57 = vpop.permute.xlu1 %2044  ;;  %v2352_v14 = vpop.permute.xlu0 %2351 }
 0x3b8   : > { %2443 = vst.msk [vmem:[%s4298_s29 + $0x20] sm:$0xff] %vm801_vm2, %v2352_v14  ;;  %2787 = vmatmul.mubr.msk.bf16.gmra.mrb[60].mxu0 %vm801_vm2, %v2045_v57 }
 0x3bb   : > { %v2346_v53 = vpop.permute.xlu1 %2345  ;;  %v2356_v42 = vpop.permute.xlu0 %2355 }
 0x3bc   : > { %2440 = vst.msk [vmem:[%s4298_s29 + $0x8] sm:$0xff] %vm801_vm2, %v2346_v53  ;;  %2445 = vst.msk [vmem:[%s4298_s29 + $0x30] sm:$0xff] %vm801_vm2, %v2356_v42 }
 0x3bf   : > { %v2350_v48 = vpop.permute.xlu1 %2349  ;;  %v2360_v61 = vpop.permute.xlu0 %2359 }
 0x3c0   : > { %2442 = vst.msk [vmem:[%s4298_s29 + $0x18] sm:$0xff] %vm801_vm2, %v2350_v48  ;;  %2447 = vst.msk [vmem:[%s4298_s29 + $0x40] sm:$0xff] %vm801_vm2, %v2360_v61 }
 0x3c3   : > { %v2354_v13 = vpop.permute.xlu1 %2353  ;;  %v2364_v60 = vpop.permute.xlu0 %2363 }
 0x3c4   : > { %2444 = vst.msk [vmem:[%s4298_s29 + $0x28] sm:$0xff] %vm801_vm2, %v2354_v13  ;;  %2449 = vst.msk [vmem:[%s4298_s29 + $0x50] sm:$0xff] %vm801_vm2, %v2364_v60 }
 0x3c7   : > { %v2358_v28 = vpop.permute.xlu1 %2357  ;;  %v2368_v44 = vpop.permute.xlu0 %2367 }
 0x3c8   : > { %2446 = vst.msk [vmem:[%s4298_s29 + $0x38] sm:$0xff] %vm801_vm2, %v2358_v28  ;;  %2451 = vst.msk [vmem:[%s4298_s29 + $0x60] sm:$0xff] %vm801_vm2, %v2368_v44 }
 0x3cb   : > { %v2362_v31 = vpop.permute.xlu1 %2361  ;;  %v2372_v20 = vpop.permute.xlu0 %2371 }
 0x3cc   : > { %2448 = vst.msk [vmem:[%s4298_s29 + $0x48] sm:$0xff] %vm801_vm2, %v2362_v31  ;;  %2453 = vst.msk [vmem:[%s4298_s29 + $0x70] sm:$0xff] %vm801_vm2, %v2372_v20 }
 0x3cf   : > { %v2366_v9 = vpop.permute.xlu1 %2365  ;;  %v2376_v63 = vpop.permute.xlu0 %2375 }
 0x3d0   : > { %2450 = vst.msk [vmem:[%s4298_s29 + $0x58] sm:$0xff] %vm801_vm2, %v2366_v9  ;;  %2455 = vst.msk [vmem:[%s4298_s29 + $0x80] sm:$0xff] %vm801_vm2, %v2376_v63 }
 0x3d3   : > { %v2370_v19 = vpop.permute.xlu1 %2369  ;;  %v2380_v40 = vpop.permute.xlu0 %2379 }
 0x3d4   : > { %2452 = vst.msk [vmem:[%s4298_s29 + $0x68] sm:$0xff] %vm801_vm2, %v2370_v19  ;;  %2457 = vst.msk [vmem:[%s4298_s29 + $0x90] sm:$0xff] %vm801_vm2, %v2380_v40 }
 0x3d7   : > { %v2374_v21 = vpop.permute.xlu1 %2373  ;;  %v2384_v12 = vpop.permute.xlu0 %2383 }
 0x3d8   : > { %2454 = vst.msk [vmem:[%s4298_s29 + $0x78] sm:$0xff] %vm801_vm2, %v2374_v21  ;;  %2459 = vst.msk [vmem:[%s4298_s29 + $0xa0] sm:$0xff] %vm801_vm2, %v2384_v12 }
 0x3db   : > { %v2378_v1 = vpop.permute.xlu1 %2377  ;;  %v2388_v52 = vpop.permute.xlu0 %2387 }
 0x3dc   : > { %2456 = vst.msk [vmem:[%s4298_s29 + $0x88] sm:$0xff] %vm801_vm2, %v2378_v1  ;;  %2461 = vst.msk [vmem:[%s4298_s29 + $0xb0] sm:$0xff] %vm801_vm2, %v2388_v52 }
 0x3df   : > { %v2382_v39 = vpop.permute.xlu1 %2381  ;;  %v2392_v37 = vpop.permute.xlu0 %2391 }
 0x3e0   : > { %2458 = vst.msk [vmem:[%s4298_s29 + $0x98] sm:$0xff] %vm801_vm2, %v2382_v39  ;;  %2463 = vst.msk [vmem:[%s4298_s29 + $0xc0] sm:$0xff] %vm801_vm2, %v2392_v37 }
 0x3e3   : > { %v2386_v2 = vpop.permute.xlu1 %2385  ;;  %v2396_v27 = vpop.permute.xlu0 %2395 }
 0x3e4   : > { %2460 = vst.msk [vmem:[%s4298_s29 + $0xa8] sm:$0xff] %vm801_vm2, %v2386_v2  ;;  %2465 = vst.msk [vmem:[%s4298_s29 + $0xd0] sm:$0xff] %vm801_vm2, %v2396_v27 }
 0x3e7   : > { %v2390_v17 = vpop.permute.xlu1 %2389  ;;  %v2400_v47 = vpop.permute.xlu0 %2399 }
 0x3e8   : > { %2462 = vst.msk [vmem:[%s4298_s29 + $0xb8] sm:$0xff] %vm801_vm2, %v2390_v17  ;;  %2467 = vst.msk [vmem:[%s4298_s29 + $0xe0] sm:$0xff] %vm801_vm2, %v2400_v47 }
 0x3eb   : > { %v2394_v55 = vpop.permute.xlu1 %2393  ;;  %v2404_v0 = vpop.permute.xlu0 %2403 }
 0x3ec   : > { %2464 = vst.msk [vmem:[%s4298_s29 + $0xc8] sm:$0xff] %vm801_vm2, %v2394_v55  ;;  %2469 = vst.msk [vmem:[%s4298_s29 + $0xf0] sm:$0xff] %vm801_vm2, %v2404_v0 }
 0x3ef   : > { %v2398_v49 = vpop.permute.xlu1 %2397 }
 0x3f0   : > { %2466 = vst.msk [vmem:[%s4298_s29 + $0xd8] sm:$0xff] %vm801_vm2, %v2398_v49 }
 0x3f3   : > { %v2402_v10 = vpop.permute.xlu1 %2401 }
 0x3f4   : > { %2468 = vst.msk [vmem:[%s4298_s29 + $0xe8] sm:$0xff] %vm801_vm2, %v2402_v10 }
 0x3f7   : > { %v2406_v11 = vpop.permute.xlu1 %2405 }
 0x3f8   : > { %2470 = vst.msk [vmem:[%s4298_s29 + $0xf8] sm:$0xff] %vm801_vm2, %v2406_v11 }
 0x417   : > { %v2760_v16 = vpop.f32.mrb[32].mxu0 }
 0x418   : > { %v2161_v6 = vadd.f32 %v2760_v16, %v4368_v34  ;;  %v2152_v46 = vpop.f32.mrb[33].mxu0 }
 0x419   : > { %v2153_v23 = vadd.f32 %v4368_v34, %v2152_v46  ;;  %v2761_v7 = vpop.f32.mrb[34].mxu0 }
 0x41a   : > { %2281 = vst [vmem:[%s4374_s17 + $0x10] sm:$0xff] %v2161_v6  ;;  %v2164_v41 = vadd.f32 %v2761_v7, %v4368_v34  ;;  %v2155_v36 = vpop.f32.mrb[35].mxu0 }
 0x41b   : > { %2279 = vst [vmem:[%s4374_s17] sm:$0xff] %v2153_v23  ;;  %v2156_v59 = vadd.f32 %v4368_v34, %v2155_v36 }
 0x41c   : > { %2282 = vst [vmem:[%s4374_s17 + $0x18] sm:$0xff] %v2164_v41 }
 0x41d   : > { %2280 = vst [vmem:[%s4374_s17 + $0x8] sm:$0xff] %v2156_v59 }
 0x427   : > { %v2764_v50 = vpop.f32.mrb[36].mxu0 }
 0x428   : > { %v2177_v38 = vadd.f32 %v2764_v50, %v4368_v34  ;;  %v2168_v24 = vpop.f32.mrb[37].mxu0 }
 0x429   : > { %v2169_v15 = vadd.f32 %v4368_v34, %v2168_v24  ;;  %v2765_v26 = vpop.f32.mrb[38].mxu0 }
 0x42a   : > { %2285 = vst [vmem:[%s4374_s17 + $0x30] sm:$0xff] %v2177_v38  ;;  %v2180_v5 = vadd.f32 %v2765_v26, %v4368_v34  ;;  %v2171_v33 = vpop.f32.mrb[39].mxu0 }
 0x42b   : > { %2283 = vst [vmem:[%s4374_s17 + $0x20] sm:$0xff] %v2169_v15  ;;  %v2172_v25 = vadd.f32 %v4368_v34, %v2171_v33 }
 0x42c   : > { %2286 = vst [vmem:[%s4374_s17 + $0x38] sm:$0xff] %v2180_v5 }
 0x42d   : > { %2284 = vst [vmem:[%s4374_s17 + $0x28] sm:$0xff] %v2172_v25 }
 0x437   : > { %v2768_v4 = vpop.f32.mrb[40].mxu0 }
 0x438   : > { %v2193_v3 = vadd.f32 %v2768_v4, %v4368_v34  ;;  %v2184_v62 = vpop.f32.mrb[41].mxu0 }
 0x439   : > { %v2185_v29 = vadd.f32 %v4368_v34, %v2184_v62  ;;  %v2769_v22 = vpop.f32.mrb[42].mxu0 }
 0x43a   : > { %2289 = vst [vmem:[%s4374_s17 + $0x50] sm:$0xff] %v2193_v3  ;;  %v2196_v56 = vadd.f32 %v2769_v22, %v4368_v34  ;;  %v2187_v54 = vpop.f32.mrb[43].mxu0 }
 0x43b   : > { %2287 = vst [vmem:[%s4374_s17 + $0x40] sm:$0xff] %v2185_v29  ;;  %v2188_v32 = vadd.f32 %v4368_v34, %v2187_v54 }
 0x43c   : > { %2290 = vst [vmem:[%s4374_s17 + $0x58] sm:$0xff] %v2196_v56 }
 0x43d   : > { %2288 = vst [vmem:[%s4374_s17 + $0x48] sm:$0xff] %v2188_v32 }
 0x447   : > { %v2772_v58 = vpop.f32.mrb[44].mxu0 }
 0x448   : > { %v2209_v43 = vadd.f32 %v2772_v58, %v4368_v34  ;;  %v2200_v45 = vpop.f32.mrb[45].mxu0 }
 0x449   : > { %v2201_v8 = vadd.f32 %v4368_v34, %v2200_v45  ;;  %v2773_v35 = vpop.f32.mrb[46].mxu0 }
 0x44a   : > { %2293 = vst [vmem:[%s4374_s17 + $0x70] sm:$0xff] %v2209_v43  ;;  %v2212_v51 = vadd.f32 %v2773_v35, %v4368_v34  ;;  %v2203_v30 = vpop.f32.mrb[47].mxu0 }
 0x44b   : > { %2291 = vst [vmem:[%s4374_s17 + $0x60] sm:$0xff] %v2201_v8  ;;  %v2204_v18 = vadd.f32 %v4368_v34, %v2203_v30 }
 0x44c   : > { %2294 = vst [vmem:[%s4374_s17 + $0x78] sm:$0xff] %v2212_v51 }
 0x44d   : > { %2292 = vst [vmem:[%s4374_s17 + $0x68] sm:$0xff] %v2204_v18 }
 0x457   : > { %v2776_v57 = vpop.f32.mrb[48].mxu0 }
 0x458   : > { %v2225_v14 = vadd.f32 %v2776_v57, %v4368_v34  ;;  %v2216_v53 = vpop.f32.mrb[49].mxu0 }
 0x459   : > { %v2217_v42 = vadd.f32 %v4368_v34, %v2216_v53  ;;  %v2777_v48 = vpop.f32.mrb[50].mxu0 }
 0x45a   : > { %2297 = vst [vmem:[%s4374_s17 + $0x90] sm:$0xff] %v2225_v14  ;;  %v2228_v61 = vadd.f32 %v2777_v48, %v4368_v34  ;;  %v2219_v13 = vpop.f32.mrb[51].mxu0 }
 0x45b   : > { %2295 = vst [vmem:[%s4374_s17 + $0x80] sm:$0xff] %v2217_v42  ;;  %v2220_v60 = vadd.f32 %v4368_v34, %v2219_v13 }
 0x45c   : > { %2298 = vst [vmem:[%s4374_s17 + $0x98] sm:$0xff] %v2228_v61 }
 0x45d   : > { %2296 = vst [vmem:[%s4374_s17 + $0x88] sm:$0xff] %v2220_v60 }
 0x467   : > { %v2780_v28 = vpop.f32.mrb[52].mxu0 }
 0x468   : > { %v2241_v44 = vadd.f32 %v2780_v28, %v4368_v34  ;;  %v2232_v31 = vpop.f32.mrb[53].mxu0 }
 0x469   : > { %v2233_v20 = vadd.f32 %v4368_v34, %v2232_v31  ;;  %v2781_v9 = vpop.f32.mrb[54].mxu0 }
 0x46a   : > { %2301 = vst [vmem:[%s4374_s17 + $0xb0] sm:$0xff] %v2241_v44  ;;  %v2244_v63 = vadd.f32 %v2781_v9, %v4368_v34  ;;  %v2235_v19 = vpop.f32.mrb[55].mxu0 }
 0x46b   : > { %2299 = vst [vmem:[%s4374_s17 + $0xa0] sm:$0xff] %v2233_v20  ;;  %v2236_v40 = vadd.f32 %v4368_v34, %v2235_v19 }
 0x46c   : > { %2302 = vst [vmem:[%s4374_s17 + $0xb8] sm:$0xff] %v2244_v63 }
 0x46d   : > { %2300 = vst [vmem:[%s4374_s17 + $0xa8] sm:$0xff] %v2236_v40 }
 0x477   : > { %v2784_v21 = vpop.f32.mrb[56].mxu0 }
 0x478   : > { %v2257_v12 = vadd.f32 %v2784_v21, %v4368_v34  ;;  %v2248_v1 = vpop.f32.mrb[57].mxu0 }
 0x479   : > { %v2249_v52 = vadd.f32 %v4368_v34, %v2248_v1  ;;  %v2785_v39 = vpop.f32.mrb[58].mxu0 }
 0x47a   : > { %2305 = vst [vmem:[%s4374_s17 + $0xd0] sm:$0xff] %v2257_v12  ;;  %v2260_v37 = vadd.f32 %v2785_v39, %v4368_v34  ;;  %v2251_v2 = vpop.f32.mrb[59].mxu0 }
 0x47b   : > { %2303 = vst [vmem:[%s4374_s17 + $0xc0] sm:$0xff] %v2249_v52  ;;  %v2252_v27 = vadd.f32 %v4368_v34, %v2251_v2 }
 0x47c   : > { %2306 = vst [vmem:[%s4374_s17 + $0xd8] sm:$0xff] %v2260_v37 }
 0x47d   : > { %2304 = vst [vmem:[%s4374_s17 + $0xc8] sm:$0xff] %v2252_v27 }
 0x48b   : > { %v2788_v17 = vpop.f32.mrb[60].mxu0 }
 0x48c   : > { %v2273_v47 = vadd.f32 %v2788_v17, %v4368_v34  ;;  %v2264_v55 = vpop.f32.mrb[61].mxu0 }
 0x48d   : > { %v2265_v0 = vadd.f32 %v4368_v34, %v2264_v55  ;;  %v2789_v49 = vpop.f32.mrb[62].mxu0 }
 0x48e   : > { %2309 = vst [vmem:[%s4374_s17 + $0xf0] sm:$0xff] %v2273_v47  ;;  %v2276_v10 = vadd.f32 %v2789_v49, %v4368_v34  ;;  %v2267_v11 = vpop.f32.mrb[63].mxu0 }
 0x48f   : > { %2307 = vst [vmem:[%s4374_s17 + $0xe0] sm:$0xff] %v2265_v0  ;;  %v2268_v16 = vadd.f32 %v4368_v34, %v2267_v11 }
 0x490   : > { %2310 = vst [vmem:[%s4374_s17 + $0xf8] sm:$0xff] %v2276_v10 }
 0x491   : > { %2308 = vst [vmem:[%s4374_s17 + $0xe8] sm:$0xff] %v2268_v16 }
 0x492 PF: > { %s20_s30 = sadd.s32 1, %s3031_s30  }
 0x493   : > { %p17_p4 = scmp.ge.s32.totalorder %s20_s30, 4  }
 0x495   :  { %19 = sbr.rel (!%p17_p4) target bundleno = 1 (0x1), region = 97 }

</bundles_post_ra>
